<compile_context>
chip_gen: v7x
topology: tpu7x:2x2x1
jax: 0.10.0
libtpu: 0.0.40
codegen_flags: <defaults>
</compile_context>

<pallas_src>
import jax
import jax.numpy as jnp
from jax.experimental import pallas as pl
from jax.experimental.pallas import tpu as pltpu


def make_encoder_kernel(T, Bph, E, H, L):
    """Fused encoder kernel: all LSTM layers + the full time recurrence for one
    contiguous batch half.

    Ref order: emb(T*Bph,E), mask(T*Bph,1),
               [w_ih(in,4H), w_hh(H,4H), b(1,4H)] * L,
               out(T*Bph,H), h_n(L,Bph,H), c_n(L,Bph,H),
               gate scratch (T*Bph, 4H)
    """
    G = 4 * H

    def kernel(*refs):
        emb_ref, mask_ref = refs[0], refs[1]
        w_refs = refs[2:2 + 3 * L]
        out_ref = refs[2 + 3 * L]
        hn_ref = refs[3 + 3 * L]
        cn_ref = refs[4 + 3 * L]
        gate_ref = refs[5 + 3 * L]                    # (T*Bph, 4H) scratch

        for l in range(L):
            wih_ref = w_refs[3 * l]                   # (in_dim, 4H)
            whh_ref = w_refs[3 * l + 1]               # (H, 4H)
            b_ref = w_refs[3 * l + 2]                 # (1, 4H)

            # Layer input for the whole sequence.  Layer 0 reads the embeddings;
            # deeper layers read the previous layer's output slab (VMEM-resident).
            x2 = emb_ref[...] if l == 0 else out_ref[...]      # (T*Bph, in_dim)

            # --- Prologue: fused input projection hoisted out of the recurrence.
            # One lane-dense (T*Bph, in) @ (in, 4H) MXU matmul, bias folded in,
            # stored to a single lane-dense (4H = 128 wide) scratch slab.
            gate_ref[...] = (
                jnp.dot(x2, wih_ref[...], preferred_element_type=jnp.float32)
                + b_ref[...])

            whh = whh_ref[...]                        # hoist (H, 4H) weight load

            # --- Serial time recurrence: one fused h @ W_hh per step ----------
            def step(t, carry, whh=whh):
                h, c = carry                                   # (Bph, H) each
                r = pl.multiple_of(t * Bph, Bph)               # aligned sublane offset
                m = mask_ref[pl.ds(r, Bph)] > 0.5              # (Bph, 1) bool

                z = gate_ref[pl.ds(r, Bph)] + jnp.dot(
                    h, whh, preferred_element_type=jnp.float32)      # (Bph, 4H)

                # Gate extraction: static lane slices of the fused vector.
                i = jax.nn.sigmoid(z[:, 0 * H:1 * H])
                f = jax.nn.sigmoid(z[:, 1 * H:2 * H])
                g = jnp.tanh(z[:, 2 * H:3 * H])
                o = jax.nn.sigmoid(z[:, 3 * H:4 * H])

                c_new = f * c + i * g
                h_new = o * jnp.tanh(c_new)

                # pack_padded_sequence semantics: freeze state past each length,
                # zero padded output positions (single-select blends).
                c_nxt = jnp.where(m, c_new, c)
                h_nxt = jnp.where(m, h_new, h)
                out_ref[pl.ds(r, Bph)] = jnp.where(m, h_new, jnp.zeros_like(h_new))
                return h_nxt, c_nxt

            h0 = jnp.zeros((Bph, H), jnp.float32)
            c0 = jnp.zeros((Bph, H), jnp.float32)
            h_n, c_n = jax.lax.fori_loop(0, T, step, (h0, c0),
                                         unroll=min(T, 8))     # bounded live ranges

            hn_ref[l] = h_n
            cn_ref[l] = c_n

    return kernel


def encoder_forward(params, source_sequence, source_mask, *, num_cores=2):
    """Mirrors Encoder.forward (inference): embedding -> dropout(identity) -> packed LSTM."""
    T, B = source_sequence.shape
    emb_table = params["embedding"]
    E = emb_table.shape[1]
    lstm = params["lstm"]
    L = len(lstm)
    H = lstm[0][1].shape[0]
    G = 4 * H

    NC = num_cores                                   # batch halves (v7x: one per TC)
    Bph = ((pl.cdiv(B, NC) + 7) // 8) * 8            # per-half batch, 8-sublane aligned
    Bp = NC * Bph

    # Pad the (cheap) token-id / mask arrays, NOT the gathered embedding slab.
    tok_p = jnp.pad(source_sequence, ((0, 0), (0, Bp - B)))          # pad id 0 (valid)
    mask_p = jnp.pad(source_mask.astype(jnp.float32), ((0, 0), (0, Bp - B)))

    emb = emb_table[tok_p].astype(jnp.float32)       # (T, Bp, E) gather (glue)
    # TODO(synk): training-mode dropout (embeddings / between layers) not implemented.

    # Layout plumbing: split the batch into NC contiguous halves so each half is a
    # contiguous (T*Bph, feat) 2D slab (no in-kernel reshapes needed).
    emb2 = emb.reshape(T, NC, Bph, E).transpose(1, 0, 2, 3).reshape(NC * T * Bph, E)
    mask2 = mask_p.reshape(T, NC, Bph).transpose(1, 0, 2).reshape(NC * T * Bph, 1)

    weight_args = []
    in_specs = [
        pl.BlockSpec((T * Bph, E), lambda c: (c, 0)),
        pl.BlockSpec((T * Bph, 1), lambda c: (c, 0)),
    ]
    for l, (w_ih, w_hh, b) in enumerate(lstm):
        in_dim = E if l == 0 else H
        weight_args += [w_ih, w_hh, b]
        in_specs += [
            pl.BlockSpec((in_dim, G), lambda c: (0, 0)),
            pl.BlockSpec((H, G), lambda c: (0, 0)),
            pl.BlockSpec((1, G), lambda c: (0, 0)),
        ]

    # ---- Explicit VMEM budget: double-buffered pipelined operands + scratch ----
    f32b = 4
    blk_bytes = T * Bph * E * f32b + T * Bph * 1 * f32b          # emb + mask blocks
    for l in range(L):
        in_dim = E if l == 0 else H
        blk_bytes += (in_dim + H + 1) * G * f32b                 # weights + bias
    blk_bytes += T * Bph * H * f32b                              # output block
    blk_bytes += 2 * L * Bph * H * f32b                          # h_n, c_n blocks
    scratch_bytes = T * Bph * G * f32b
    vmem_limit = int(min(128 * 1024 * 1024,
                         2 * blk_bytes + scratch_bytes + (8 << 20)))

    # ---- Advisory cost estimate for the XLA scheduler ----
    flops = 0
    for l in range(L):
        in_dim = E if l == 0 else H
        flops += NC * (2 * T * Bph * in_dim * G        # fused input projection
                       + 2 * T * Bph * H * G           # recurrent matmuls
                       + 10 * T * Bph * H)             # gate elementwise
    transcendentals = NC * L * T * Bph * H * 5
    bytes_accessed = (emb2.size + mask2.size
                      + sum(int(w.size) for trio in lstm for w in trio)
                      + NC * T * Bph * H + 2 * NC * L * Bph * H) * f32b
    cost = pl.CostEstimate(flops=int(flops), transcendentals=int(transcendentals),
                           bytes_accessed=int(bytes_accessed))

    grid_spec = pltpu.PrefetchScalarGridSpec(
        num_scalar_prefetch=0,
        grid=(NC,),                                  # parallel over batch halves
        in_specs=in_specs,
        out_specs=[
            pl.BlockSpec((T * Bph, H), lambda c: (c, 0)),
            pl.BlockSpec((L, Bph, H), lambda c: (c, 0, 0)),
            pl.BlockSpec((L, Bph, H), lambda c: (c, 0, 0)),
        ],
        scratch_shapes=[pltpu.VMEM((T * Bph, G), jnp.float32)],
    )

    out2, hn2, cn2 = pl.pallas_call(
        make_encoder_kernel(T, Bph, E, H, L),
        out_shape=(
            jax.ShapeDtypeStruct((NC * T * Bph, H), jnp.float32),
            jax.ShapeDtypeStruct((NC * L, Bph, H), jnp.float32),
            jax.ShapeDtypeStruct((NC * L, Bph, H), jnp.float32),
        ),
        grid_spec=grid_spec,
        compiler_params=pltpu.CompilerParams(
            dimension_semantics=("parallel",),
            vmem_limit_bytes=vmem_limit),
        cost_estimate=cost,
    )(emb2, mask2, *weight_args)

    # Reassemble the batch halves and drop the batch padding.
    outputs = (out2.reshape(NC, T, Bph, H).transpose(1, 0, 2, 3)
               .reshape(T, Bp, H)[:, :B, :])
    hidden = (hn2.reshape(NC, L, Bph, H).transpose(1, 0, 2, 3)
              .reshape(L, Bp, H)[:, :B, :])
    cell = (cn2.reshape(NC, L, Bph, H).transpose(1, 0, 2, 3)
            .reshape(L, Bp, H)[:, :B, :])
    return outputs, hidden, cell


def init_encoder_params(key, input_size, hidden_size, embedding_size, num_layers):
    """PyTorch-style init; LSTM weights stored gate-fused and pre-transposed:
    w_ih: (in_dim, 4H), w_hh: (H, 4H), b: (1, 4H) with PyTorch gate order i,f,g,o."""
    keys = jax.random.split(key, 1 + 4 * num_layers)
    params = {"embedding": jax.random.normal(
        keys[0], (input_size, embedding_size), dtype=jnp.float32)}
    H = hidden_size
    bound = 1.0 / float(H) ** 0.5
    lstm = []
    for l in range(num_layers):
        in_dim = embedding_size if l == 0 else hidden_size
        k_wih, k_whh, k_bih, k_bhh = keys[1 + 4 * l: 1 + 4 * (l + 1)]
        w_ih = jax.random.uniform(k_wih, (4 * H, in_dim), minval=-bound, maxval=bound,
                                  dtype=jnp.float32)
        w_hh = jax.random.uniform(k_whh, (4 * H, H), minval=-bound, maxval=bound,
                                  dtype=jnp.float32)
        b_ih = jax.random.uniform(k_bih, (4 * H,), minval=-bound, maxval=bound,
                                  dtype=jnp.float32)
        b_hh = jax.random.uniform(k_bhh, (4 * H,), minval=-bound, maxval=bound,
                                  dtype=jnp.float32)
        lstm.append((w_ih.T,                              # (in_dim, 4H)
                     w_hh.T,                              # (H, 4H)
                     (b_ih + b_hh).reshape(1, 4 * H)))    # (1, 4H)
    params["lstm"] = lstm
    return params


def encoder_forward_ref(params, source_sequence, source_mask):
    """Pure-JAX reference (lax.scan) for validation of the Pallas kernel."""
    emb = params["embedding"][source_sequence]
    mask3 = source_mask.astype(jnp.float32)[:, :, None]
    x = emb
    hiddens, cells = [], []
    for (w_ih, w_hh, b) in params["lstm"]:
        H = w_hh.shape[0]
        B = x.shape[1]

        def step(carry, inp, w_ih=w_ih, w_hh=w_hh, b=b, H=H):
            h, c = carry
            xt, mt = inp
            z = xt @ w_ih + h @ w_hh + b
            i = jax.nn.sigmoid(z[:, 0 * H:1 * H])
            f = jax.nn.sigmoid(z[:, 1 * H:2 * H])
            g = jnp.tanh(z[:, 2 * H:3 * H])
            o = jax.nn.sigmoid(z[:, 3 * H:4 * H])
            c_new = f * c + i * g
            h_new = o * jnp.tanh(c_new)
            keep = mt > 0.5
            c_nxt = jnp.where(keep, c_new, c)
            h_nxt = jnp.where(keep, h_new, h)
            return (h_nxt, c_nxt), jnp.where(keep, h_new, jnp.zeros_like(h_new))

        init = (jnp.zeros((B, H), jnp.float32), jnp.zeros((B, H), jnp.float32))
        (h_n, c_n), outs = jax.lax.scan(step, init, (x, mask3))
        x = outs
        hiddens.append(h_n)
        cells.append(c_n)
    return x, jnp.stack(hiddens, 0), jnp.stack(cells, 0)


if __name__ == "__main__":
    # Module hyperparameters (small, consistent with Encoder.__init__)
    input_size = 50        # vocab
    hidden_size = 32
    embedding_size = 32
    num_layers = 2
    dropout = 0.1          # identity at inference

    T, B = 8, 4
    key = jax.random.PRNGKey(0)
    k_params, k_tokens = jax.random.split(key)

    params = init_encoder_params(k_params, input_size, hidden_size,
                                 embedding_size, num_layers)

    source_sequence = jax.random.randint(k_tokens, (T, B), 0, input_size, dtype=jnp.int32)
    lengths = jnp.array([8, 6, 5, 3], dtype=jnp.int32)                     # per-batch lengths
    source_mask = (jnp.arange(T)[:, None] < lengths[None, :]).astype(jnp.float32)  # (T, B)

    outputs, hidden, cell = jax.block_until_ready(
        encoder_forward(params, source_sequence, source_mask))

    ref_out, ref_h, ref_c = encoder_forward_ref(params, source_sequence, source_mask)
    assert outputs.shape == (T, B, hidden_size)
    assert hidden.shape == (num_layers, B, hidden_size)
    assert cell.shape == (num_layers, B, hidden_size)
    assert jnp.allclose(outputs, ref_out, atol=1e-5, rtol=1e-5)
    assert jnp.allclose(hidden, ref_h, atol=1e-5, rtol=1e-5)
    assert jnp.allclose(cell, ref_c, atol=1e-5, rtol=1e-5)

    print("KERNEL_OK")
</pallas_src>

<mosaic_0001>
module attributes {stable_mosaic.version = 11 : i64} {
  func.func @kernel(%arg0: i32, %arg1: memref<64x32xf32, #tpu.memory_space<vmem>>, %arg2: memref<64x1xf32, #tpu.memory_space<vmem>>, %arg3: memref<32x128xf32, #tpu.memory_space<vmem>>, %arg4: memref<32x128xf32, #tpu.memory_space<vmem>>, %arg5: memref<1x128xf32, #tpu.memory_space<vmem>>, %arg6: memref<32x128xf32, #tpu.memory_space<vmem>>, %arg7: memref<32x128xf32, #tpu.memory_space<vmem>>, %arg8: memref<1x128xf32, #tpu.memory_space<vmem>>, %arg9: memref<64x32xf32, #tpu.memory_space<vmem>>, %arg10: memref<2x8x32xf32, #tpu.memory_space<vmem>>, %arg11: memref<2x8x32xf32, #tpu.memory_space<vmem>>, %arg12: memref<64x128xf32, #tpu.memory_space<vmem>>) attributes {dimension_semantics = [#tpu.dimension_semantics<parallel>], iteration_bounds = array<i64: 2>, scalar_prefetch = 0 : i64, scratch_operands = 1 : i64, tpu.core_type = #tpu.core_type<tc>, window_params = [{transform_indices = @transform_0, window_bounds = array<i64: 64, 32>}, {transform_indices = @transform_1, window_bounds = array<i64: 64, 1>}, {pipeline_mode = #tpu.pipeline_mode<synchronous>, transform_indices = @transform_2, window_bounds = array<i64: 32, 128>}, {pipeline_mode = #tpu.pipeline_mode<synchronous>, transform_indices = @transform_3, window_bounds = array<i64: 32, 128>}, {pipeline_mode = #tpu.pipeline_mode<synchronous>, transform_indices = @transform_4, window_bounds = array<i64: 1, 128>}, {pipeline_mode = #tpu.pipeline_mode<synchronous>, transform_indices = @transform_5, window_bounds = array<i64: 32, 128>}, {pipeline_mode = #tpu.pipeline_mode<synchronous>, transform_indices = @transform_6, window_bounds = array<i64: 32, 128>}, {pipeline_mode = #tpu.pipeline_mode<synchronous>, transform_indices = @transform_7, window_bounds = array<i64: 1, 128>}, {transform_indices = @transform_8, window_bounds = array<i64: 64, 32>}, {transform_indices = @transform_9, window_bounds = array<i64: 2, 8, 32>}, {transform_indices = @transform_10, window_bounds = array<i64: 2, 8, 32>}]} {
    %c0 = arith.constant 0 : index
    %c0_0 = arith.constant 0 : index
    %0 = vector.load %arg1[%c0, %c0_0] : memref<64x32xf32, #tpu.memory_space<vmem>>, vector<64x32xf32>
    %c0_1 = arith.constant 0 : index
    %c0_2 = arith.constant 0 : index
    %1 = vector.load %arg3[%c0_1, %c0_2] : memref<32x128xf32, #tpu.memory_space<vmem>>, vector<32x128xf32>
    %cst = arith.constant dense<0.000000e+00> : vector<64x128xf32>
    %2 = tpu.matmul %0, %1, %cst {dimension_numbers = #tpu.dot_dimension_numbers<[1], [0], [0], [1], [0, 0, 1, 1], [], []>} : vector<64x32xf32>, vector<32x128xf32>, vector<64x128xf32> -> vector<64x128xf32>
    %c0_3 = arith.constant 0 : index
    %c0_4 = arith.constant 0 : index
    %3 = vector.load %arg5[%c0_3, %c0_4] : memref<1x128xf32, #tpu.memory_space<vmem>>, vector<1x128xf32>
    %4 = vector.broadcast %3 : vector<1x128xf32> to vector<64x128xf32>
    %5 = arith.addf %2, %4 : vector<64x128xf32>
    %c0_5 = arith.constant 0 : index
    %c0_6 = arith.constant 0 : index
    %6 = vector.load %arg12[%c0_5, %c0_6] : memref<64x128xf32, #tpu.memory_space<vmem>>, vector<64x128xf32>
    tpu.vector_store %arg12[%c0_5, %c0_6], %5 {strides = array<i32>} : memref<64x128xf32, #tpu.memory_space<vmem>>, vector<64x128xf32>,
    %c0_7 = arith.constant 0 : index
    %c0_8 = arith.constant 0 : index
    %7 = vector.load %arg4[%c0_7, %c0_8] : memref<32x128xf32, #tpu.memory_space<vmem>>, vector<32x128xf32>
    %cst_9 = arith.constant 0.000000e+00 : f32
    %8 = vector.broadcast %cst_9 : f32 to vector<8x32xf32>
    %cst_10 = arith.constant 0.000000e+00 : f32
    %9 = vector.broadcast %cst_10 : f32 to vector<8x32xf32>
    %c0_i32 = arith.constant 0 : i32
    %c8_i32 = arith.constant 8 : i32
    %10 = arith.muli %c0_i32, %c8_i32 : i32
    %11 = tpu.assume_multiple %10, 8 : i32
    %12 = arith.index_cast %11 : i32 to index
    %c0_11 = arith.constant 0 : index
    %13 = vector.load %arg2[%12, %c0_11] : memref<64x1xf32, #tpu.memory_space<vmem>>, vector<8x1xf32>
    %cst_12 = arith.constant 5.000000e-01 : f32
    %14 = vector.broadcast %cst_12 : f32 to vector<8x1xf32>
    %15 = arith.cmpf ogt, %13, %14 : vector<8x1xf32>
    %16 = arith.index_cast %11 : i32 to index
    %c0_13 = arith.constant 0 : index
    %17 = vector.load %arg12[%16, %c0_13] : memref<64x128xf32, #tpu.memory_space<vmem>>, vector<8x128xf32>
    %cst_14 = arith.constant dense<0.000000e+00> : vector<8x128xf32>
    %18 = tpu.matmul %8, %7, %cst_14 {dimension_numbers = #tpu.dot_dimension_numbers<[1], [0], [0], [1], [0, 0, 1, 1], [], []>} : vector<8x32xf32>, vector<32x128xf32>, vector<8x128xf32> -> vector<8x128xf32>
    %19 = arith.addf %17, %18 : vector<8x128xf32>
    %20 = vector.extract_strided_slice %19 {offsets = [0, 0], sizes = [8, 32], strides = [1, 1]} : vector<8x128xf32> to vector<8x32xf32>
    %21 = arith.negf %20 : vector<8x32xf32>
    %22 = math.exp %21 : vector<8x32xf32>
    %cst_15 = arith.constant 1.000000e+00 : f32
    %23 = vector.broadcast %cst_15 : f32 to vector<8x32xf32>
    %24 = arith.addf %23, %22 : vector<8x32xf32>
    %25 = arith.divf %23, %24 : vector<8x32xf32>
    %26 = vector.extract_strided_slice %19 {offsets = [0, 32], sizes = [8, 32], strides = [1, 1]} : vector<8x128xf32> to vector<8x32xf32>
    %27 = arith.negf %26 : vector<8x32xf32>
    %28 = math.exp %27 : vector<8x32xf32>
    %cst_16 = arith.constant 1.000000e+00 : f32
    %29 = vector.broadcast %cst_16 : f32 to vector<8x32xf32>
    %30 = arith.addf %29, %28 : vector<8x32xf32>
    %31 = arith.divf %29, %30 : vector<8x32xf32>
    %32 = vector.extract_strided_slice %19 {offsets = [0, 64], sizes = [8, 32], strides = [1, 1]} : vector<8x128xf32> to vector<8x32xf32>
    %33 = math.tanh %32 : vector<8x32xf32>
    %34 = vector.extract_strided_slice %19 {offsets = [0, 96], sizes = [8, 32], strides = [1, 1]} : vector<8x128xf32> to vector<8x32xf32>
    %35 = arith.negf %34 : vector<8x32xf32>
    %36 = math.exp %35 : vector<8x32xf32>
    %cst_17 = arith.constant 1.000000e+00 : f32
    %37 = vector.broadcast %cst_17 : f32 to vector<8x32xf32>
    %38 = arith.addf %37, %36 : vector<8x32xf32>
    %39 = arith.divf %37, %38 : vector<8x32xf32>
    %40 = arith.mulf %31, %9 : vector<8x32xf32>
    %41 = arith.mulf %25, %33 : vector<8x32xf32>
    %42 = arith.addf %40, %41 : vector<8x32xf32>
    %43 = math.tanh %42 : vector<8x32xf32>
    %44 = arith.mulf %39, %43 : vector<8x32xf32>
    %45 = vector.shape_cast %15 : vector<8x1xi1> to vector<8x1xi1>
    %46 = vector.broadcast %45 : vector<8x1xi1> to vector<8x32xi1>
    %47 = arith.select %46, %42, %9 : vector<8x32xi1>, vector<8x32xf32>
    %48 = vector.shape_cast %15 : vector<8x1xi1> to vector<8x1xi1>
    %49 = vector.broadcast %48 : vector<8x1xi1> to vector<8x32xi1>
    %50 = arith.select %49, %44, %8 : vector<8x32xi1>, vector<8x32xf32>
    %cst_18 = arith.constant 0.000000e+00 : f32
    %51 = vector.broadcast %cst_18 : f32 to vector<8x32xf32>
    %52 = vector.shape_cast %15 : vector<8x1xi1> to vector<8x1xi1>
    %53 = vector.broadcast %52 : vector<8x1xi1> to vector<8x32xi1>
    %54 = arith.select %53, %44, %51 : vector<8x32xi1>, vector<8x32xf32>
    %55 = arith.index_cast %11 : i32 to index
    %c0_19 = arith.constant 0 : index
    %56 = vector.load %arg9[%55, %c0_19] : memref<64x32xf32, #tpu.memory_space<vmem>>, vector<8x32xf32>
    tpu.vector_store %arg9[%55, %c0_19], %54 {strides = array<i32>} : memref<64x32xf32, #tpu.memory_space<vmem>>, vector<8x32xf32>,
    %c1_i32 = arith.constant 1 : i32
    %c8_i32_20 = arith.constant 8 : i32
    %57 = arith.muli %c1_i32, %c8_i32_20 : i32
    %58 = tpu.assume_multiple %57, 8 : i32
    %59 = arith.index_cast %58 : i32 to index
    %c0_21 = arith.constant 0 : index
    %60 = vector.load %arg2[%59, %c0_21] : memref<64x1xf32, #tpu.memory_space<vmem>>, vector<8x1xf32>
    %cst_22 = arith.constant 5.000000e-01 : f32
    %61 = vector.broadcast %cst_22 : f32 to vector<8x1xf32>
    %62 = arith.cmpf ogt, %60, %61 : vector<8x1xf32>
    %63 = arith.index_cast %58 : i32 to index
    %c0_23 = arith.constant 0 : index
    %64 = vector.load %arg12[%63, %c0_23] : memref<64x128xf32, #tpu.memory_space<vmem>>, vector<8x128xf32>
    %cst_24 = arith.constant dense<0.000000e+00> : vector<8x128xf32>
    %65 = tpu.matmul %50, %7, %cst_24 {dimension_numbers = #tpu.dot_dimension_numbers<[1], [0], [0], [1], [0, 0, 1, 1], [], []>} : vector<8x32xf32>, vector<32x128xf32>, vector<8x128xf32> -> vector<8x128xf32>
    %66 = arith.addf %64, %65 : vector<8x128xf32>
    %67 = vector.extract_strided_slice %66 {offsets = [0, 0], sizes = [8, 32], strides = [1, 1]} : vector<8x128xf32> to vector<8x32xf32>
    %68 = arith.negf %67 : vector<8x32xf32>
    %69 = math.exp %68 : vector<8x32xf32>
    %cst_25 = arith.constant 1.000000e+00 : f32
    %70 = vector.broadcast %cst_25 : f32 to vector<8x32xf32>
    %71 = arith.addf %70, %69 : vector<8x32xf32>
    %72 = arith.divf %70, %71 : vector<8x32xf32>
    %73 = vector.extract_strided_slice %66 {offsets = [0, 32], sizes = [8, 32], strides = [1, 1]} : vector<8x128xf32> to vector<8x32xf32>
    %74 = arith.negf %73 : vector<8x32xf32>
    %75 = math.exp %74 : vector<8x32xf32>
    %cst_26 = arith.constant 1.000000e+00 : f32
    %76 = vector.broadcast %cst_26 : f32 to vector<8x32xf32>
    %77 = arith.addf %76, %75 : vector<8x32xf32>
    %78 = arith.divf %76, %77 : vector<8x32xf32>
    %79 = vector.extract_strided_slice %66 {offsets = [0, 64], sizes = [8, 32], strides = [1, 1]} : vector<8x128xf32> to vector<8x32xf32>
    %80 = math.tanh %79 : vector<8x32xf32>
    %81 = vector.extract_strided_slice %66 {offsets = [0, 96], sizes = [8, 32], strides = [1, 1]} : vector<8x128xf32> to vector<8x32xf32>
    %82 = arith.negf %81 : vector<8x32xf32>
    %83 = math.exp %82 : vector<8x32xf32>
    %cst_27 = arith.constant 1.000000e+00 : f32
    %84 = vector.broadcast %cst_27 : f32 to vector<8x32xf32>
    %85 = arith.addf %84, %83 : vector<8x32xf32>
    %86 = arith.divf %84, %85 : vector<8x32xf32>
    %87 = arith.mulf %78, %47 : vector<8x32xf32>
    %88 = arith.mulf %72, %80 : vector<8x32xf32>
    %89 = arith.addf %87, %88 : vector<8x32xf32>
    %90 = math.tanh %89 : vector<8x32xf32>
    %91 = arith.mulf %86, %90 : vector<8x32xf32>
    %92 = vector.shape_cast %62 : vector<8x1xi1> to vector<8x1xi1>
    %93 = vector.broadcast %92 : vector<8x1xi1> to vector<8x32xi1>
    %94 = arith.select %93, %89, %47 : vector<8x32xi1>, vector<8x32xf32>
    %95 = vector.shape_cast %62 : vector<8x1xi1> to vector<8x1xi1>
    %96 = vector.broadcast %95 : vector<8x1xi1> to vector<8x32xi1>
    %97 = arith.select %96, %91, %50 : vector<8x32xi1>, vector<8x32xf32>
    %cst_28 = arith.constant 0.000000e+00 : f32
    %98 = vector.broadcast %cst_28 : f32 to vector<8x32xf32>
    %99 = vector.shape_cast %62 : vector<8x1xi1> to vector<8x1xi1>
    %100 = vector.broadcast %99 : vector<8x1xi1> to vector<8x32xi1>
    %101 = arith.select %100, %91, %98 : vector<8x32xi1>, vector<8x32xf32>
    %102 = arith.index_cast %58 : i32 to index
    %c0_29 = arith.constant 0 : index
    %103 = vector.load %arg9[%102, %c0_29] : memref<64x32xf32, #tpu.memory_space<vmem>>, vector<8x32xf32>
    tpu.vector_store %arg9[%102, %c0_29], %101 {strides = array<i32>} : memref<64x32xf32, #tpu.memory_space<vmem>>, vector<8x32xf32>,
    %c2_i32 = arith.constant 2 : i32
    %c8_i32_30 = arith.constant 8 : i32
    %104 = arith.muli %c2_i32, %c8_i32_30 : i32
    %105 = tpu.assume_multiple %104, 8 : i32
    %106 = arith.index_cast %105 : i32 to index
    %c0_31 = arith.constant 0 : index
    %107 = vector.load %arg2[%106, %c0_31] : memref<64x1xf32, #tpu.memory_space<vmem>>, vector<8x1xf32>
    %cst_32 = arith.constant 5.000000e-01 : f32
    %108 = vector.broadcast %cst_32 : f32 to vector<8x1xf32>
    %109 = arith.cmpf ogt, %107, %108 : vector<8x1xf32>
    %110 = arith.index_cast %105 : i32 to index
    %c0_33 = arith.constant 0 : index
    %111 = vector.load %arg12[%110, %c0_33] : memref<64x128xf32, #tpu.memory_space<vmem>>, vector<8x128xf32>
    %cst_34 = arith.constant dense<0.000000e+00> : vector<8x128xf32>
    %112 = tpu.matmul %97, %7, %cst_34 {dimension_numbers = #tpu.dot_dimension_numbers<[1], [0], [0], [1], [0, 0, 1, 1], [], []>} : vector<8x32xf32>, vector<32x128xf32>, vector<8x128xf32> -> vector<8x128xf32>
    %113 = arith.addf %111, %112 : vector<8x128xf32>
    %114 = vector.extract_strided_slice %113 {offsets = [0, 0], sizes = [8, 32], strides = [1, 1]} : vector<8x128xf32> to vector<8x32xf32>
    %115 = arith.negf %114 : vector<8x32xf32>
    %116 = math.exp %115 : vector<8x32xf32>
    %cst_35 = arith.constant 1.000000e+00 : f32
    %117 = vector.broadcast %cst_35 : f32 to vector<8x32xf32>
    %118 = arith.addf %117, %116 : vector<8x32xf32>
    %119 = arith.divf %117, %118 : vector<8x32xf32>
    %120 = vector.extract_strided_slice %113 {offsets = [0, 32], sizes = [8, 32], strides = [1, 1]} : vector<8x128xf32> to vector<8x32xf32>
    %121 = arith.negf %120 : vector<8x32xf32>
    %122 = math.exp %121 : vector<8x32xf32>
    %cst_36 = arith.constant 1.000000e+00 : f32
    %123 = vector.broadcast %cst_36 : f32 to vector<8x32xf32>
    %124 = arith.addf %123, %122 : vector<8x32xf32>
    %125 = arith.divf %123, %124 : vector<8x32xf32>
    %126 = vector.extract_strided_slice %113 {offsets = [0, 64], sizes = [8, 32], strides = [1, 1]} : vector<8x128xf32> to vector<8x32xf32>
    %127 = math.tanh %126 : vector<8x32xf32>
    %128 = vector.extract_strided_slice %113 {offsets = [0, 96], sizes = [8, 32], strides = [1, 1]} : vector<8x128xf32> to vector<8x32xf32>
    %129 = arith.negf %128 : vector<8x32xf32>
    %130 = math.exp %129 : vector<8x32xf32>
    %cst_37 = arith.constant 1.000000e+00 : f32
    %131 = vector.broadcast %cst_37 : f32 to vector<8x32xf32>
    %132 = arith.addf %131, %130 : vector<8x32xf32>
    %133 = arith.divf %131, %132 : vector<8x32xf32>
    %134 = arith.mulf %125, %94 : vector<8x32xf32>
    %135 = arith.mulf %119, %127 : vector<8x32xf32>
    %136 = arith.addf %134, %135 : vector<8x32xf32>
    %137 = math.tanh %136 : vector<8x32xf32>
    %138 = arith.mulf %133, %137 : vector<8x32xf32>
    %139 = vector.shape_cast %109 : vector<8x1xi1> to vector<8x1xi1>
    %140 = vector.broadcast %139 : vector<8x1xi1> to vector<8x32xi1>
    %141 = arith.select %140, %136, %94 : vector<8x32xi1>, vector<8x32xf32>
    %142 = vector.shape_cast %109 : vector<8x1xi1> to vector<8x1xi1>
    %143 = vector.broadcast %142 : vector<8x1xi1> to vector<8x32xi1>
    %144 = arith.select %143, %138, %97 : vector<8x32xi1>, vector<8x32xf32>
    %cst_38 = arith.constant 0.000000e+00 : f32
    %145 = vector.broadcast %cst_38 : f32 to vector<8x32xf32>
    %146 = vector.shape_cast %109 : vector<8x1xi1> to vector<8x1xi1>
    %147 = vector.broadcast %146 : vector<8x1xi1> to vector<8x32xi1>
    %148 = arith.select %147, %138, %145 : vector<8x32xi1>, vector<8x32xf32>
    %149 = arith.index_cast %105 : i32 to index
    %c0_39 = arith.constant 0 : index
    %150 = vector.load %arg9[%149, %c0_39] : memref<64x32xf32, #tpu.memory_space<vmem>>, vector<8x32xf32>
    tpu.vector_store %arg9[%149, %c0_39], %148 {strides = array<i32>} : memref<64x32xf32, #tpu.memory_space<vmem>>, vector<8x32xf32>,
    %c3_i32 = arith.constant 3 : i32
    %c8_i32_40 = arith.constant 8 : i32
    %151 = arith.muli %c3_i32, %c8_i32_40 : i32
    %152 = tpu.assume_multiple %151, 8 : i32
    %153 = arith.index_cast %152 : i32 to index
    %c0_41 = arith.constant 0 : index
    %154 = vector.load %arg2[%153, %c0_41] : memref<64x1xf32, #tpu.memory_space<vmem>>, vector<8x1xf32>
    %cst_42 = arith.constant 5.000000e-01 : f32
    %155 = vector.broadcast %cst_42 : f32 to vector<8x1xf32>
    %156 = arith.cmpf ogt, %154, %155 : vector<8x1xf32>
    %157 = arith.index_cast %152 : i32 to index
    %c0_43 = arith.constant 0 : index
    %158 = vector.load %arg12[%157, %c0_43] : memref<64x128xf32, #tpu.memory_space<vmem>>, vector<8x128xf32>
    %cst_44 = arith.constant dense<0.000000e+00> : vector<8x128xf32>
    %159 = tpu.matmul %144, %7, %cst_44 {dimension_numbers = #tpu.dot_dimension_numbers<[1], [0], [0], [1], [0, 0, 1, 1], [], []>} : vector<8x32xf32>, vector<32x128xf32>, vector<8x128xf32> -> vector<8x128xf32>
    %160 = arith.addf %158, %159 : vector<8x128xf32>
    %161 = vector.extract_strided_slice %160 {offsets = [0, 0], sizes = [8, 32], strides = [1, 1]} : vector<8x128xf32> to vector<8x32xf32>
    %162 = arith.negf %161 : vector<8x32xf32>
    %163 = math.exp %162 : vector<8x32xf32>
    %cst_45 = arith.constant 1.000000e+00 : f32
    %164 = vector.broadcast %cst_45 : f32 to vector<8x32xf32>
    %165 = arith.addf %164, %163 : vector<8x32xf32>
    %166 = arith.divf %164, %165 : vector<8x32xf32>
    %167 = vector.extract_strided_slice %160 {offsets = [0, 32], sizes = [8, 32], strides = [1, 1]} : vector<8x128xf32> to vector<8x32xf32>
    %168 = arith.negf %167 : vector<8x32xf32>
    %169 = math.exp %168 : vector<8x32xf32>
    %cst_46 = arith.constant 1.000000e+00 : f32
    %170 = vector.broadcast %cst_46 : f32 to vector<8x32xf32>
    %171 = arith.addf %170, %169 : vector<8x32xf32>
    %172 = arith.divf %170, %171 : vector<8x32xf32>
    %173 = vector.extract_strided_slice %160 {offsets = [0, 64], sizes = [8, 32], strides = [1, 1]} : vector<8x128xf32> to vector<8x32xf32>
    %174 = math.tanh %173 : vector<8x32xf32>
    %175 = vector.extract_strided_slice %160 {offsets = [0, 96], sizes = [8, 32], strides = [1, 1]} : vector<8x128xf32> to vector<8x32xf32>
    %176 = arith.negf %175 : vector<8x32xf32>
    %177 = math.exp %176 : vector<8x32xf32>
    %cst_47 = arith.constant 1.000000e+00 : f32
    %178 = vector.broadcast %cst_47 : f32 to vector<8x32xf32>
    %179 = arith.addf %178, %177 : vector<8x32xf32>
    %180 = arith.divf %178, %179 : vector<8x32xf32>
    %181 = arith.mulf %172, %141 : vector<8x32xf32>
    %182 = arith.mulf %166, %174 : vector<8x32xf32>
    %183 = arith.addf %181, %182 : vector<8x32xf32>
    %184 = math.tanh %183 : vector<8x32xf32>
    %185 = arith.mulf %180, %184 : vector<8x32xf32>
    %186 = vector.shape_cast %156 : vector<8x1xi1> to vector<8x1xi1>
    %187 = vector.broadcast %186 : vector<8x1xi1> to vector<8x32xi1>
    %188 = arith.select %187, %183, %141 : vector<8x32xi1>, vector<8x32xf32>
    %189 = vector.shape_cast %156 : vector<8x1xi1> to vector<8x1xi1>
    %190 = vector.broadcast %189 : vector<8x1xi1> to vector<8x32xi1>
    %191 = arith.select %190, %185, %144 : vector<8x32xi1>, vector<8x32xf32>
    %cst_48 = arith.constant 0.000000e+00 : f32
    %192 = vector.broadcast %cst_48 : f32 to vector<8x32xf32>
    %193 = vector.shape_cast %156 : vector<8x1xi1> to vector<8x1xi1>
    %194 = vector.broadcast %193 : vector<8x1xi1> to vector<8x32xi1>
    %195 = arith.select %194, %185, %192 : vector<8x32xi1>, vector<8x32xf32>
    %196 = arith.index_cast %152 : i32 to index
    %c0_49 = arith.constant 0 : index
    %197 = vector.load %arg9[%196, %c0_49] : memref<64x32xf32, #tpu.memory_space<vmem>>, vector<8x32xf32>
    tpu.vector_store %arg9[%196, %c0_49], %195 {strides = array<i32>} : memref<64x32xf32, #tpu.memory_space<vmem>>, vector<8x32xf32>,
    %c4_i32 = arith.constant 4 : i32
    %c8_i32_50 = arith.constant 8 : i32
    %198 = arith.muli %c4_i32, %c8_i32_50 : i32
    %199 = tpu.assume_multiple %198, 8 : i32
    %200 = arith.index_cast %199 : i32 to index
    %c0_51 = arith.constant 0 : index
    %201 = vector.load %arg2[%200, %c0_51] : memref<64x1xf32, #tpu.memory_space<vmem>>, vector<8x1xf32>
    %cst_52 = arith.constant 5.000000e-01 : f32
    %202 = vector.broadcast %cst_52 : f32 to vector<8x1xf32>
    %203 = arith.cmpf ogt, %201, %202 : vector<8x1xf32>
    %204 = arith.index_cast %199 : i32 to index
    %c0_53 = arith.constant 0 : index
    %205 = vector.load %arg12[%204, %c0_53] : memref<64x128xf32, #tpu.memory_space<vmem>>, vector<8x128xf32>
    %cst_54 = arith.constant dense<0.000000e+00> : vector<8x128xf32>
    %206 = tpu.matmul %191, %7, %cst_54 {dimension_numbers = #tpu.dot_dimension_numbers<[1], [0], [0], [1], [0, 0, 1, 1], [], []>} : vector<8x32xf32>, vector<32x128xf32>, vector<8x128xf32> -> vector<8x128xf32>
    %207 = arith.addf %205, %206 : vector<8x128xf32>
    %208 = vector.extract_strided_slice %207 {offsets = [0, 0], sizes = [8, 32], strides = [1, 1]} : vector<8x128xf32> to vector<8x32xf32>
    %209 = arith.negf %208 : vector<8x32xf32>
    %210 = math.exp %209 : vector<8x32xf32>
    %cst_55 = arith.constant 1.000000e+00 : f32
    %211 = vector.broadcast %cst_55 : f32 to vector<8x32xf32>
    %212 = arith.addf %211, %210 : vector<8x32xf32>
    %213 = arith.divf %211, %212 : vector<8x32xf32>
    %214 = vector.extract_strided_slice %207 {offsets = [0, 32], sizes = [8, 32], strides = [1, 1]} : vector<8x128xf32> to vector<8x32xf32>
    %215 = arith.negf %214 : vector<8x32xf32>
    %216 = math.exp %215 : vector<8x32xf32>
    %cst_56 = arith.constant 1.000000e+00 : f32
    %217 = vector.broadcast %cst_56 : f32 to vector<8x32xf32>
    %218 = arith.addf %217, %216 : vector<8x32xf32>
    %219 = arith.divf %217, %218 : vector<8x32xf32>
    %220 = vector.extract_strided_slice %207 {offsets = [0, 64], sizes = [8, 32], strides = [1, 1]} : vector<8x128xf32> to vector<8x32xf32>
    %221 = math.tanh %220 : vector<8x32xf32>
    %222 = vector.extract_strided_slice %207 {offsets = [0, 96], sizes = [8, 32], strides = [1, 1]} : vector<8x128xf32> to vector<8x32xf32>
    %223 = arith.negf %222 : vector<8x32xf32>
    %224 = math.exp %223 : vector<8x32xf32>
    %cst_57 = arith.constant 1.000000e+00 : f32
    %225 = vector.broadcast %cst_57 : f32 to vector<8x32xf32>
    %226 = arith.addf %225, %224 : vector<8x32xf32>
    %227 = arith.divf %225, %226 : vector<8x32xf32>
    %228 = arith.mulf %219, %188 : vector<8x32xf32>
    %229 = arith.mulf %213, %221 : vector<8x32xf32>
    %230 = arith.addf %228, %229 : vector<8x32xf32>
    %231 = math.tanh %230 : vector<8x32xf32>
    %232 = arith.mulf %227, %231 : vector<8x32xf32>
    %233 = vector.shape_cast %203 : vector<8x1xi1> to vector<8x1xi1>
    %234 = vector.broadcast %233 : vector<8x1xi1> to vector<8x32xi1>
    %235 = arith.select %234, %230, %188 : vector<8x32xi1>, vector<8x32xf32>
    %236 = vector.shape_cast %203 : vector<8x1xi1> to vector<8x1xi1>
    %237 = vector.broadcast %236 : vector<8x1xi1> to vector<8x32xi1>
    %238 = arith.select %237, %232, %191 : vector<8x32xi1>, vector<8x32xf32>
    %cst_58 = arith.constant 0.000000e+00 : f32
    %239 = vector.broadcast %cst_58 : f32 to vector<8x32xf32>
    %240 = vector.shape_cast %203 : vector<8x1xi1> to vector<8x1xi1>
    %241 = vector.broadcast %240 : vector<8x1xi1> to vector<8x32xi1>
    %242 = arith.select %241, %232, %239 : vector<8x32xi1>, vector<8x32xf32>
    %243 = arith.index_cast %199 : i32 to index
    %c0_59 = arith.constant 0 : index
    %244 = vector.load %arg9[%243, %c0_59] : memref<64x32xf32, #tpu.memory_space<vmem>>, vector<8x32xf32>
    tpu.vector_store %arg9[%243, %c0_59], %242 {strides = array<i32>} : memref<64x32xf32, #tpu.memory_space<vmem>>, vector<8x32xf32>,
    %c5_i32 = arith.constant 5 : i32
    %c8_i32_60 = arith.constant 8 : i32
    %245 = arith.muli %c5_i32, %c8_i32_60 : i32
    %246 = tpu.assume_multiple %245, 8 : i32
    %247 = arith.index_cast %246 : i32 to index
    %c0_61 = arith.constant 0 : index
    %248 = vector.load %arg2[%247, %c0_61] : memref<64x1xf32, #tpu.memory_space<vmem>>, vector<8x1xf32>
    %cst_62 = arith.constant 5.000000e-01 : f32
    %249 = vector.broadcast %cst_62 : f32 to vector<8x1xf32>
    %250 = arith.cmpf ogt, %248, %249 : vector<8x1xf32>
    %251 = arith.index_cast %246 : i32 to index
    %c0_63 = arith.constant 0 : index
    %252 = vector.load %arg12[%251, %c0_63] : memref<64x128xf32, #tpu.memory_space<vmem>>, vector<8x128xf32>
    %cst_64 = arith.constant dense<0.000000e+00> : vector<8x128xf32>
    %253 = tpu.matmul %238, %7, %cst_64 {dimension_numbers = #tpu.dot_dimension_numbers<[1], [0], [0], [1], [0, 0, 1, 1], [], []>} : vector<8x32xf32>, vector<32x128xf32>, vector<8x128xf32> -> vector<8x128xf32>
    %254 = arith.addf %252, %253 : vector<8x128xf32>
    %255 = vector.extract_strided_slice %254 {offsets = [0, 0], sizes = [8, 32], strides = [1, 1]} : vector<8x128xf32> to vector<8x32xf32>
    %256 = arith.negf %255 : vector<8x32xf32>
    %257 = math.exp %256 : vector<8x32xf32>
    %cst_65 = arith.constant 1.000000e+00 : f32
    %258 = vector.broadcast %cst_65 : f32 to vector<8x32xf32>
    %259 = arith.addf %258, %257 : vector<8x32xf32>
    %260 = arith.divf %258, %259 : vector<8x32xf32>
    %261 = vector.extract_strided_slice %254 {offsets = [0, 32], sizes = [8, 32], strides = [1, 1]} : vector<8x128xf32> to vector<8x32xf32>
    %262 = arith.negf %261 : vector<8x32xf32>
    %263 = math.exp %262 : vector<8x32xf32>
    %cst_66 = arith.constant 1.000000e+00 : f32
    %264 = vector.broadcast %cst_66 : f32 to vector<8x32xf32>
    %265 = arith.addf %264, %263 : vector<8x32xf32>
    %266 = arith.divf %264, %265 : vector<8x32xf32>
    %267 = vector.extract_strided_slice %254 {offsets = [0, 64], sizes = [8, 32], strides = [1, 1]} : vector<8x128xf32> to vector<8x32xf32>
    %268 = math.tanh %267 : vector<8x32xf32>
    %269 = vector.extract_strided_slice %254 {offsets = [0, 96], sizes = [8, 32], strides = [1, 1]} : vector<8x128xf32> to vector<8x32xf32>
    %270 = arith.negf %269 : vector<8x32xf32>
    %271 = math.exp %270 : vector<8x32xf32>
    %cst_67 = arith.constant 1.000000e+00 : f32
    %272 = vector.broadcast %cst_67 : f32 to vector<8x32xf32>
    %273 = arith.addf %272, %271 : vector<8x32xf32>
    %274 = arith.divf %272, %273 : vector<8x32xf32>
    %275 = arith.mulf %266, %235 : vector<8x32xf32>
    %276 = arith.mulf %260, %268 : vector<8x32xf32>
    %277 = arith.addf %275, %276 : vector<8x32xf32>
    %278 = math.tanh %277 : vector<8x32xf32>
    %279 = arith.mulf %274, %278 : vector<8x32xf32>
    %280 = vector.shape_cast %250 : vector<8x1xi1> to vector<8x1xi1>
    %281 = vector.broadcast %280 : vector<8x1xi1> to vector<8x32xi1>
    %282 = arith.select %281, %277, %235 : vector<8x32xi1>, vector<8x32xf32>
    %283 = vector.shape_cast %250 : vector<8x1xi1> to vector<8x1xi1>
    %284 = vector.broadcast %283 : vector<8x1xi1> to vector<8x32xi1>
    %285 = arith.select %284, %279, %238 : vector<8x32xi1>, vector<8x32xf32>
    %cst_68 = arith.constant 0.000000e+00 : f32
    %286 = vector.broadcast %cst_68 : f32 to vector<8x32xf32>
    %287 = vector.shape_cast %250 : vector<8x1xi1> to vector<8x1xi1>
    %288 = vector.broadcast %287 : vector<8x1xi1> to vector<8x32xi1>
    %289 = arith.select %288, %279, %286 : vector<8x32xi1>, vector<8x32xf32>
    %290 = arith.index_cast %246 : i32 to index
    %c0_69 = arith.constant 0 : index
    %291 = vector.load %arg9[%290, %c0_69] : memref<64x32xf32, #tpu.memory_space<vmem>>, vector<8x32xf32>
    tpu.vector_store %arg9[%290, %c0_69], %289 {strides = array<i32>} : memref<64x32xf32, #tpu.memory_space<vmem>>, vector<8x32xf32>,
    %c6_i32 = arith.constant 6 : i32
    %c8_i32_70 = arith.constant 8 : i32
    %292 = arith.muli %c6_i32, %c8_i32_70 : i32
    %293 = tpu.assume_multiple %292, 8 : i32
    %294 = arith.index_cast %293 : i32 to index
    %c0_71 = arith.constant 0 : index
    %295 = vector.load %arg2[%294, %c0_71] : memref<64x1xf32, #tpu.memory_space<vmem>>, vector<8x1xf32>
    %cst_72 = arith.constant 5.000000e-01 : f32
    %296 = vector.broadcast %cst_72 : f32 to vector<8x1xf32>
    %297 = arith.cmpf ogt, %295, %296 : vector<8x1xf32>
    %298 = arith.index_cast %293 : i32 to index
    %c0_73 = arith.constant 0 : index
    %299 = vector.load %arg12[%298, %c0_73] : memref<64x128xf32, #tpu.memory_space<vmem>>, vector<8x128xf32>
    %cst_74 = arith.constant dense<0.000000e+00> : vector<8x128xf32>
    %300 = tpu.matmul %285, %7, %cst_74 {dimension_numbers = #tpu.dot_dimension_numbers<[1], [0], [0], [1], [0, 0, 1, 1], [], []>} : vector<8x32xf32>, vector<32x128xf32>, vector<8x128xf32> -> vector<8x128xf32>
    %301 = arith.addf %299, %300 : vector<8x128xf32>
    %302 = vector.extract_strided_slice %301 {offsets = [0, 0], sizes = [8, 32], strides = [1, 1]} : vector<8x128xf32> to vector<8x32xf32>
    %303 = arith.negf %302 : vector<8x32xf32>
    %304 = math.exp %303 : vector<8x32xf32>
    %cst_75 = arith.constant 1.000000e+00 : f32
    %305 = vector.broadcast %cst_75 : f32 to vector<8x32xf32>
    %306 = arith.addf %305, %304 : vector<8x32xf32>
    %307 = arith.divf %305, %306 : vector<8x32xf32>
    %308 = vector.extract_strided_slice %301 {offsets = [0, 32], sizes = [8, 32], strides = [1, 1]} : vector<8x128xf32> to vector<8x32xf32>
    %309 = arith.negf %308 : vector<8x32xf32>
    %310 = math.exp %309 : vector<8x32xf32>
    %cst_76 = arith.constant 1.000000e+00 : f32
    %311 = vector.broadcast %cst_76 : f32 to vector<8x32xf32>
    %312 = arith.addf %311, %310 : vector<8x32xf32>
    %313 = arith.divf %311, %312 : vector<8x32xf32>
    %314 = vector.extract_strided_slice %301 {offsets = [0, 64], sizes = [8, 32], strides = [1, 1]} : vector<8x128xf32> to vector<8x32xf32>
    %315 = math.tanh %314 : vector<8x32xf32>
    %316 = vector.extract_strided_slice %301 {offsets = [0, 96], sizes = [8, 32], strides = [1, 1]} : vector<8x128xf32> to vector<8x32xf32>
    %317 = arith.negf %316 : vector<8x32xf32>
    %318 = math.exp %317 : vector<8x32xf32>
    %cst_77 = arith.constant 1.000000e+00 : f32
    %319 = vector.broadcast %cst_77 : f32 to vector<8x32xf32>
    %320 = arith.addf %319, %318 : vector<8x32xf32>
    %321 = arith.divf %319, %320 : vector<8x32xf32>
    %322 = arith.mulf %313, %282 : vector<8x32xf32>
    %323 = arith.mulf %307, %315 : vector<8x32xf32>
    %324 = arith.addf %322, %323 : vector<8x32xf32>
    %325 = math.tanh %324 : vector<8x32xf32>
    %326 = arith.mulf %321, %325 : vector<8x32xf32>
    %327 = vector.shape_cast %297 : vector<8x1xi1> to vector<8x1xi1>
    %328 = vector.broadcast %327 : vector<8x1xi1> to vector<8x32xi1>
    %329 = arith.select %328, %324, %282 : vector<8x32xi1>, vector<8x32xf32>
    %330 = vector.shape_cast %297 : vector<8x1xi1> to vector<8x1xi1>
    %331 = vector.broadcast %330 : vector<8x1xi1> to vector<8x32xi1>
    %332 = arith.select %331, %326, %285 : vector<8x32xi1>, vector<8x32xf32>
    %cst_78 = arith.constant 0.000000e+00 : f32
    %333 = vector.broadcast %cst_78 : f32 to vector<8x32xf32>
    %334 = vector.shape_cast %297 : vector<8x1xi1> to vector<8x1xi1>
    %335 = vector.broadcast %334 : vector<8x1xi1> to vector<8x32xi1>
    %336 = arith.select %335, %326, %333 : vector<8x32xi1>, vector<8x32xf32>
    %337 = arith.index_cast %293 : i32 to index
    %c0_79 = arith.constant 0 : index
    %338 = vector.load %arg9[%337, %c0_79] : memref<64x32xf32, #tpu.memory_space<vmem>>, vector<8x32xf32>
    tpu.vector_store %arg9[%337, %c0_79], %336 {strides = array<i32>} : memref<64x32xf32, #tpu.memory_space<vmem>>, vector<8x32xf32>,
    %c7_i32 = arith.constant 7 : i32
    %c8_i32_80 = arith.constant 8 : i32
    %339 = arith.muli %c7_i32, %c8_i32_80 : i32
    %340 = tpu.assume_multiple %339, 8 : i32
    %341 = arith.index_cast %340 : i32 to index
    %c0_81 = arith.constant 0 : index
    %342 = vector.load %arg2[%341, %c0_81] : memref<64x1xf32, #tpu.memory_space<vmem>>, vector<8x1xf32>
    %cst_82 = arith.constant 5.000000e-01 : f32
    %343 = vector.broadcast %cst_82 : f32 to vector<8x1xf32>
    %344 = arith.cmpf ogt, %342, %343 : vector<8x1xf32>
    %345 = arith.index_cast %340 : i32 to index
    %c0_83 = arith.constant 0 : index
    %346 = vector.load %arg12[%345, %c0_83] : memref<64x128xf32, #tpu.memory_space<vmem>>, vector<8x128xf32>
    %cst_84 = arith.constant dense<0.000000e+00> : vector<8x128xf32>
    %347 = tpu.matmul %332, %7, %cst_84 {dimension_numbers = #tpu.dot_dimension_numbers<[1], [0], [0], [1], [0, 0, 1, 1], [], []>} : vector<8x32xf32>, vector<32x128xf32>, vector<8x128xf32> -> vector<8x128xf32>
    %348 = arith.addf %346, %347 : vector<8x128xf32>
    %349 = vector.extract_strided_slice %348 {offsets = [0, 0], sizes = [8, 32], strides = [1, 1]} : vector<8x128xf32> to vector<8x32xf32>
    %350 = arith.negf %349 : vector<8x32xf32>
    %351 = math.exp %350 : vector<8x32xf32>
    %cst_85 = arith.constant 1.000000e+00 : f32
    %352 = vector.broadcast %cst_85 : f32 to vector<8x32xf32>
    %353 = arith.addf %352, %351 : vector<8x32xf32>
    %354 = arith.divf %352, %353 : vector<8x32xf32>
    %355 = vector.extract_strided_slice %348 {offsets = [0, 32], sizes = [8, 32], strides = [1, 1]} : vector<8x128xf32> to vector<8x32xf32>
    %356 = arith.negf %355 : vector<8x32xf32>
    %357 = math.exp %356 : vector<8x32xf32>
    %cst_86 = arith.constant 1.000000e+00 : f32
    %358 = vector.broadcast %cst_86 : f32 to vector<8x32xf32>
    %359 = arith.addf %358, %357 : vector<8x32xf32>
    %360 = arith.divf %358, %359 : vector<8x32xf32>
    %361 = vector.extract_strided_slice %348 {offsets = [0, 64], sizes = [8, 32], strides = [1, 1]} : vector<8x128xf32> to vector<8x32xf32>
    %362 = math.tanh %361 : vector<8x32xf32>
    %363 = vector.extract_strided_slice %348 {offsets = [0, 96], sizes = [8, 32], strides = [1, 1]} : vector<8x128xf32> to vector<8x32xf32>
    %364 = arith.negf %363 : vector<8x32xf32>
    %365 = math.exp %364 : vector<8x32xf32>
    %cst_87 = arith.constant 1.000000e+00 : f32
    %366 = vector.broadcast %cst_87 : f32 to vector<8x32xf32>
    %367 = arith.addf %366, %365 : vector<8x32xf32>
    %368 = arith.divf %366, %367 : vector<8x32xf32>
    %369 = arith.mulf %360, %329 : vector<8x32xf32>
    %370 = arith.mulf %354, %362 : vector<8x32xf32>
    %371 = arith.addf %369, %370 : vector<8x32xf32>
    %372 = math.tanh %371 : vector<8x32xf32>
    %373 = arith.mulf %368, %372 : vector<8x32xf32>
    %374 = vector.shape_cast %344 : vector<8x1xi1> to vector<8x1xi1>
    %375 = vector.broadcast %374 : vector<8x1xi1> to vector<8x32xi1>
    %376 = arith.select %375, %371, %329 : vector<8x32xi1>, vector<8x32xf32>
    %377 = vector.shape_cast %344 : vector<8x1xi1> to vector<8x1xi1>
    %378 = vector.broadcast %377 : vector<8x1xi1> to vector<8x32xi1>
    %379 = arith.select %378, %373, %332 : vector<8x32xi1>, vector<8x32xf32>
    %cst_88 = arith.constant 0.000000e+00 : f32
    %380 = vector.broadcast %cst_88 : f32 to vector<8x32xf32>
    %381 = vector.shape_cast %344 : vector<8x1xi1> to vector<8x1xi1>
    %382 = vector.broadcast %381 : vector<8x1xi1> to vector<8x32xi1>
    %383 = arith.select %382, %373, %380 : vector<8x32xi1>, vector<8x32xf32>
    %384 = arith.index_cast %340 : i32 to index
    %c0_89 = arith.constant 0 : index
    %385 = vector.load %arg9[%384, %c0_89] : memref<64x32xf32, #tpu.memory_space<vmem>>, vector<8x32xf32>
    tpu.vector_store %arg9[%384, %c0_89], %383 {strides = array<i32>} : memref<64x32xf32, #tpu.memory_space<vmem>>, vector<8x32xf32>,
    %c8_i32_90 = arith.constant 8 : i32
    %c0_91 = arith.constant 0 : index
    %c0_92 = arith.constant 0 : index
    %c0_93 = arith.constant 0 : index
    %386 = vector.load %arg10[%c0_91, %c0_92, %c0_93] : memref<2x8x32xf32, #tpu.memory_space<vmem>>, vector<1x8x32xf32>
    %387 = vector.shape_cast %386 : vector<1x8x32xf32> to vector<8x32xf32>
    %388 = vector.shape_cast %379 : vector<8x32xf32> to vector<1x8x32xf32>
    tpu.vector_store %arg10[%c0_91, %c0_92, %c0_93], %388 {strides = array<i32>} : memref<2x8x32xf32, #tpu.memory_space<vmem>>, vector<1x8x32xf32>,
    %c0_94 = arith.constant 0 : index
    %c0_95 = arith.constant 0 : index
    %c0_96 = arith.constant 0 : index
    %389 = vector.load %arg11[%c0_94, %c0_95, %c0_96] : memref<2x8x32xf32, #tpu.memory_space<vmem>>, vector<1x8x32xf32>
    %390 = vector.shape_cast %389 : vector<1x8x32xf32> to vector<8x32xf32>
    %391 = vector.shape_cast %376 : vector<8x32xf32> to vector<1x8x32xf32>
    tpu.vector_store %arg11[%c0_94, %c0_95, %c0_96], %391 {strides = array<i32>} : memref<2x8x32xf32, #tpu.memory_space<vmem>>, vector<1x8x32xf32>,
    %c0_97 = arith.constant 0 : index
    %c0_98 = arith.constant 0 : index
    %392 = vector.load %arg9[%c0_97, %c0_98] : memref<64x32xf32, #tpu.memory_space<vmem>>, vector<64x32xf32>
    %c0_99 = arith.constant 0 : index
    %c0_100 = arith.constant 0 : index
    %393 = vector.load %arg6[%c0_99, %c0_100] : memref<32x128xf32, #tpu.memory_space<vmem>>, vector<32x128xf32>
    %cst_101 = arith.constant dense<0.000000e+00> : vector<64x128xf32>
    %394 = tpu.matmul %392, %393, %cst_101 {dimension_numbers = #tpu.dot_dimension_numbers<[1], [0], [0], [1], [0, 0, 1, 1], [], []>} : vector<64x32xf32>, vector<32x128xf32>, vector<64x128xf32> -> vector<64x128xf32>
    %c0_102 = arith.constant 0 : index
    %c0_103 = arith.constant 0 : index
    %395 = vector.load %arg8[%c0_102, %c0_103] : memref<1x128xf32, #tpu.memory_space<vmem>>, vector<1x128xf32>
    %396 = vector.broadcast %395 : vector<1x128xf32> to vector<64x128xf32>
    %397 = arith.addf %394, %396 : vector<64x128xf32>
    %c0_104 = arith.constant 0 : index
    %c0_105 = arith.constant 0 : index
    %398 = vector.load %arg12[%c0_104, %c0_105] : memref<64x128xf32, #tpu.memory_space<vmem>>, vector<64x128xf32>
    tpu.vector_store %arg12[%c0_104, %c0_105], %397 {strides = array<i32>} : memref<64x128xf32, #tpu.memory_space<vmem>>, vector<64x128xf32>,
    %c0_106 = arith.constant 0 : index
    %c0_107 = arith.constant 0 : index
    %399 = vector.load %arg7[%c0_106, %c0_107] : memref<32x128xf32, #tpu.memory_space<vmem>>, vector<32x128xf32>
    %cst_108 = arith.constant 0.000000e+00 : f32
    %400 = vector.broadcast %cst_108 : f32 to vector<8x32xf32>
    %cst_109 = arith.constant 0.000000e+00 : f32
    %401 = vector.broadcast %cst_109 : f32 to vector<8x32xf32>
    %c0_i32_110 = arith.constant 0 : i32
    %c8_i32_111 = arith.constant 8 : i32
    %402 = arith.muli %c0_i32_110, %c8_i32_111 : i32
    %403 = tpu.assume_multiple %402, 8 : i32
    %404 = arith.index_cast %403 : i32 to index
    %c0_112 = arith.constant 0 : index
    %405 = vector.load %arg2[%404, %c0_112] : memref<64x1xf32, #tpu.memory_space<vmem>>, vector<8x1xf32>
    %cst_113 = arith.constant 5.000000e-01 : f32
    %406 = vector.broadcast %cst_113 : f32 to vector<8x1xf32>
    %407 = arith.cmpf ogt, %405, %406 : vector<8x1xf32>
    %408 = arith.index_cast %403 : i32 to index
    %c0_114 = arith.constant 0 : index
    %409 = vector.load %arg12[%408, %c0_114] : memref<64x128xf32, #tpu.memory_space<vmem>>, vector<8x128xf32>
    %cst_115 = arith.constant dense<0.000000e+00> : vector<8x128xf32>
    %410 = tpu.matmul %400, %399, %cst_115 {dimension_numbers = #tpu.dot_dimension_numbers<[1], [0], [0], [1], [0, 0, 1, 1], [], []>} : vector<8x32xf32>, vector<32x128xf32>, vector<8x128xf32> -> vector<8x128xf32>
    %411 = arith.addf %409, %410 : vector<8x128xf32>
    %412 = vector.extract_strided_slice %411 {offsets = [0, 0], sizes = [8, 32], strides = [1, 1]} : vector<8x128xf32> to vector<8x32xf32>
    %413 = arith.negf %412 : vector<8x32xf32>
    %414 = math.exp %413 : vector<8x32xf32>
    %cst_116 = arith.constant 1.000000e+00 : f32
    %415 = vector.broadcast %cst_116 : f32 to vector<8x32xf32>
    %416 = arith.addf %415, %414 : vector<8x32xf32>
    %417 = arith.divf %415, %416 : vector<8x32xf32>
    %418 = vector.extract_strided_slice %411 {offsets = [0, 32], sizes = [8, 32], strides = [1, 1]} : vector<8x128xf32> to vector<8x32xf32>
    %419 = arith.negf %418 : vector<8x32xf32>
    %420 = math.exp %419 : vector<8x32xf32>
    %cst_117 = arith.constant 1.000000e+00 : f32
    %421 = vector.broadcast %cst_117 : f32 to vector<8x32xf32>
    %422 = arith.addf %421, %420 : vector<8x32xf32>
    %423 = arith.divf %421, %422 : vector<8x32xf32>
    %424 = vector.extract_strided_slice %411 {offsets = [0, 64], sizes = [8, 32], strides = [1, 1]} : vector<8x128xf32> to vector<8x32xf32>
    %425 = math.tanh %424 : vector<8x32xf32>
    %426 = vector.extract_strided_slice %411 {offsets = [0, 96], sizes = [8, 32], strides = [1, 1]} : vector<8x128xf32> to vector<8x32xf32>
    %427 = arith.negf %426 : vector<8x32xf32>
    %428 = math.exp %427 : vector<8x32xf32>
    %cst_118 = arith.constant 1.000000e+00 : f32
    %429 = vector.broadcast %cst_118 : f32 to vector<8x32xf32>
    %430 = arith.addf %429, %428 : vector<8x32xf32>
    %431 = arith.divf %429, %430 : vector<8x32xf32>
    %432 = arith.mulf %423, %401 : vector<8x32xf32>
    %433 = arith.mulf %417, %425 : vector<8x32xf32>
    %434 = arith.addf %432, %433 : vector<8x32xf32>
    %435 = math.tanh %434 : vector<8x32xf32>
    %436 = arith.mulf %431, %435 : vector<8x32xf32>
    %437 = vector.shape_cast %407 : vector<8x1xi1> to vector<8x1xi1>
    %438 = vector.broadcast %437 : vector<8x1xi1> to vector<8x32xi1>
    %439 = arith.select %438, %434, %401 : vector<8x32xi1>, vector<8x32xf32>
    %440 = vector.shape_cast %407 : vector<8x1xi1> to vector<8x1xi1>
    %441 = vector.broadcast %440 : vector<8x1xi1> to vector<8x32xi1>
    %442 = arith.select %441, %436, %400 : vector<8x32xi1>, vector<8x32xf32>
    %cst_119 = arith.constant 0.000000e+00 : f32
    %443 = vector.broadcast %cst_119 : f32 to vector<8x32xf32>
    %444 = vector.shape_cast %407 : vector<8x1xi1> to vector<8x1xi1>
    %445 = vector.broadcast %444 : vector<8x1xi1> to vector<8x32xi1>
    %446 = arith.select %445, %436, %443 : vector<8x32xi1>, vector<8x32xf32>
    %447 = arith.index_cast %403 : i32 to index
    %c0_120 = arith.constant 0 : index
    %448 = vector.load %arg9[%447, %c0_120] : memref<64x32xf32, #tpu.memory_space<vmem>>, vector<8x32xf32>
    tpu.vector_store %arg9[%447, %c0_120], %446 {strides = array<i32>} : memref<64x32xf32, #tpu.memory_space<vmem>>, vector<8x32xf32>,
    %c1_i32_121 = arith.constant 1 : i32
    %c8_i32_122 = arith.constant 8 : i32
    %449 = arith.muli %c1_i32_121, %c8_i32_122 : i32
    %450 = tpu.assume_multiple %449, 8 : i32
    %451 = arith.index_cast %450 : i32 to index
    %c0_123 = arith.constant 0 : index
    %452 = vector.load %arg2[%451, %c0_123] : memref<64x1xf32, #tpu.memory_space<vmem>>, vector<8x1xf32>
    %cst_124 = arith.constant 5.000000e-01 : f32
    %453 = vector.broadcast %cst_124 : f32 to vector<8x1xf32>
    %454 = arith.cmpf ogt, %452, %453 : vector<8x1xf32>
    %455 = arith.index_cast %450 : i32 to index
    %c0_125 = arith.constant 0 : index
    %456 = vector.load %arg12[%455, %c0_125] : memref<64x128xf32, #tpu.memory_space<vmem>>, vector<8x128xf32>
    %cst_126 = arith.constant dense<0.000000e+00> : vector<8x128xf32>
    %457 = tpu.matmul %442, %399, %cst_126 {dimension_numbers = #tpu.dot_dimension_numbers<[1], [0], [0], [1], [0, 0, 1, 1], [], []>} : vector<8x32xf32>, vector<32x128xf32>, vector<8x128xf32> -> vector<8x128xf32>
    %458 = arith.addf %456, %457 : vector<8x128xf32>
    %459 = vector.extract_strided_slice %458 {offsets = [0, 0], sizes = [8, 32], strides = [1, 1]} : vector<8x128xf32> to vector<8x32xf32>
    %460 = arith.negf %459 : vector<8x32xf32>
    %461 = math.exp %460 : vector<8x32xf32>
    %cst_127 = arith.constant 1.000000e+00 : f32
    %462 = vector.broadcast %cst_127 : f32 to vector<8x32xf32>
    %463 = arith.addf %462, %461 : vector<8x32xf32>
    %464 = arith.divf %462, %463 : vector<8x32xf32>
    %465 = vector.extract_strided_slice %458 {offsets = [0, 32], sizes = [8, 32], strides = [1, 1]} : vector<8x128xf32> to vector<8x32xf32>
    %466 = arith.negf %465 : vector<8x32xf32>
    %467 = math.exp %466 : vector<8x32xf32>
    %cst_128 = arith.constant 1.000000e+00 : f32
    %468 = vector.broadcast %cst_128 : f32 to vector<8x32xf32>
    %469 = arith.addf %468, %467 : vector<8x32xf32>
    %470 = arith.divf %468, %469 : vector<8x32xf32>
    %471 = vector.extract_strided_slice %458 {offsets = [0, 64], sizes = [8, 32], strides = [1, 1]} : vector<8x128xf32> to vector<8x32xf32>
    %472 = math.tanh %471 : vector<8x32xf32>
    %473 = vector.extract_strided_slice %458 {offsets = [0, 96], sizes = [8, 32], strides = [1, 1]} : vector<8x128xf32> to vector<8x32xf32>
    %474 = arith.negf %473 : vector<8x32xf32>
    %475 = math.exp %474 : vector<8x32xf32>
    %cst_129 = arith.constant 1.000000e+00 : f32
    %476 = vector.broadcast %cst_129 : f32 to vector<8x32xf32>
    %477 = arith.addf %476, %475 : vector<8x32xf32>
    %478 = arith.divf %476, %477 : vector<8x32xf32>
    %479 = arith.mulf %470, %439 : vector<8x32xf32>
    %480 = arith.mulf %464, %472 : vector<8x32xf32>
    %481 = arith.addf %479, %480 : vector<8x32xf32>
    %482 = math.tanh %481 : vector<8x32xf32>
    %483 = arith.mulf %478, %482 : vector<8x32xf32>
    %484 = vector.shape_cast %454 : vector<8x1xi1> to vector<8x1xi1>
    %485 = vector.broadcast %484 : vector<8x1xi1> to vector<8x32xi1>
    %486 = arith.select %485, %481, %439 : vector<8x32xi1>, vector<8x32xf32>
    %487 = vector.shape_cast %454 : vector<8x1xi1> to vector<8x1xi1>
    %488 = vector.broadcast %487 : vector<8x1xi1> to vector<8x32xi1>
    %489 = arith.select %488, %483, %442 : vector<8x32xi1>, vector<8x32xf32>
    %cst_130 = arith.constant 0.000000e+00 : f32
    %490 = vector.broadcast %cst_130 : f32 to vector<8x32xf32>
    %491 = vector.shape_cast %454 : vector<8x1xi1> to vector<8x1xi1>
    %492 = vector.broadcast %491 : vector<8x1xi1> to vector<8x32xi1>
    %493 = arith.select %492, %483, %490 : vector<8x32xi1>, vector<8x32xf32>
    %494 = arith.index_cast %450 : i32 to index
    %c0_131 = arith.constant 0 : index
    %495 = vector.load %arg9[%494, %c0_131] : memref<64x32xf32, #tpu.memory_space<vmem>>, vector<8x32xf32>
    tpu.vector_store %arg9[%494, %c0_131], %493 {strides = array<i32>} : memref<64x32xf32, #tpu.memory_space<vmem>>, vector<8x32xf32>,
    %c2_i32_132 = arith.constant 2 : i32
    %c8_i32_133 = arith.constant 8 : i32
    %496 = arith.muli %c2_i32_132, %c8_i32_133 : i32
    %497 = tpu.assume_multiple %496, 8 : i32
    %498 = arith.index_cast %497 : i32 to index
    %c0_134 = arith.constant 0 : index
    %499 = vector.load %arg2[%498, %c0_134] : memref<64x1xf32, #tpu.memory_space<vmem>>, vector<8x1xf32>
    %cst_135 = arith.constant 5.000000e-01 : f32
    %500 = vector.broadcast %cst_135 : f32 to vector<8x1xf32>
    %501 = arith.cmpf ogt, %499, %500 : vector<8x1xf32>
    %502 = arith.index_cast %497 : i32 to index
    %c0_136 = arith.constant 0 : index
    %503 = vector.load %arg12[%502, %c0_136] : memref<64x128xf32, #tpu.memory_space<vmem>>, vector<8x128xf32>
    %cst_137 = arith.constant dense<0.000000e+00> : vector<8x128xf32>
    %504 = tpu.matmul %489, %399, %cst_137 {dimension_numbers = #tpu.dot_dimension_numbers<[1], [0], [0], [1], [0, 0, 1, 1], [], []>} : vector<8x32xf32>, vector<32x128xf32>, vector<8x128xf32> -> vector<8x128xf32>
    %505 = arith.addf %503, %504 : vector<8x128xf32>
    %506 = vector.extract_strided_slice %505 {offsets = [0, 0], sizes = [8, 32], strides = [1, 1]} : vector<8x128xf32> to vector<8x32xf32>
    %507 = arith.negf %506 : vector<8x32xf32>
    %508 = math.exp %507 : vector<8x32xf32>
    %cst_138 = arith.constant 1.000000e+00 : f32
    %509 = vector.broadcast %cst_138 : f32 to vector<8x32xf32>
    %510 = arith.addf %509, %508 : vector<8x32xf32>
    %511 = arith.divf %509, %510 : vector<8x32xf32>
    %512 = vector.extract_strided_slice %505 {offsets = [0, 32], sizes = [8, 32], strides = [1, 1]} : vector<8x128xf32> to vector<8x32xf32>
    %513 = arith.negf %512 : vector<8x32xf32>
    %514 = math.exp %513 : vector<8x32xf32>
    %cst_139 = arith.constant 1.000000e+00 : f32
    %515 = vector.broadcast %cst_139 : f32 to vector<8x32xf32>
    %516 = arith.addf %515, %514 : vector<8x32xf32>
    %517 = arith.divf %515, %516 : vector<8x32xf32>
    %518 = vector.extract_strided_slice %505 {offsets = [0, 64], sizes = [8, 32], strides = [1, 1]} : vector<8x128xf32> to vector<8x32xf32>
    %519 = math.tanh %518 : vector<8x32xf32>
    %520 = vector.extract_strided_slice %505 {offsets = [0, 96], sizes = [8, 32], strides = [1, 1]} : vector<8x128xf32> to vector<8x32xf32>
    %521 = arith.negf %520 : vector<8x32xf32>
    %522 = math.exp %521 : vector<8x32xf32>
    %cst_140 = arith.constant 1.000000e+00 : f32
    %523 = vector.broadcast %cst_140 : f32 to vector<8x32xf32>
    %524 = arith.addf %523, %522 : vector<8x32xf32>
    %525 = arith.divf %523, %524 : vector<8x32xf32>
    %526 = arith.mulf %517, %486 : vector<8x32xf32>
    %527 = arith.mulf %511, %519 : vector<8x32xf32>
    %528 = arith.addf %526, %527 : vector<8x32xf32>
    %529 = math.tanh %528 : vector<8x32xf32>
    %530 = arith.mulf %525, %529 : vector<8x32xf32>
    %531 = vector.shape_cast %501 : vector<8x1xi1> to vector<8x1xi1>
    %532 = vector.broadcast %531 : vector<8x1xi1> to vector<8x32xi1>
    %533 = arith.select %532, %528, %486 : vector<8x32xi1>, vector<8x32xf32>
    %534 = vector.shape_cast %501 : vector<8x1xi1> to vector<8x1xi1>
    %535 = vector.broadcast %534 : vector<8x1xi1> to vector<8x32xi1>
    %536 = arith.select %535, %530, %489 : vector<8x32xi1>, vector<8x32xf32>
    %cst_141 = arith.constant 0.000000e+00 : f32
    %537 = vector.broadcast %cst_141 : f32 to vector<8x32xf32>
    %538 = vector.shape_cast %501 : vector<8x1xi1> to vector<8x1xi1>
    %539 = vector.broadcast %538 : vector<8x1xi1> to vector<8x32xi1>
    %540 = arith.select %539, %530, %537 : vector<8x32xi1>, vector<8x32xf32>
    %541 = arith.index_cast %497 : i32 to index
    %c0_142 = arith.constant 0 : index
    %542 = vector.load %arg9[%541, %c0_142] : memref<64x32xf32, #tpu.memory_space<vmem>>, vector<8x32xf32>
    tpu.vector_store %arg9[%541, %c0_142], %540 {strides = array<i32>} : memref<64x32xf32, #tpu.memory_space<vmem>>, vector<8x32xf32>,
    %c3_i32_143 = arith.constant 3 : i32
    %c8_i32_144 = arith.constant 8 : i32
    %543 = arith.muli %c3_i32_143, %c8_i32_144 : i32
    %544 = tpu.assume_multiple %543, 8 : i32
    %545 = arith.index_cast %544 : i32 to index
    %c0_145 = arith.constant 0 : index
    %546 = vector.load %arg2[%545, %c0_145] : memref<64x1xf32, #tpu.memory_space<vmem>>, vector<8x1xf32>
    %cst_146 = arith.constant 5.000000e-01 : f32
    %547 = vector.broadcast %cst_146 : f32 to vector<8x1xf32>
    %548 = arith.cmpf ogt, %546, %547 : vector<8x1xf32>
    %549 = arith.index_cast %544 : i32 to index
    %c0_147 = arith.constant 0 : index
    %550 = vector.load %arg12[%549, %c0_147] : memref<64x128xf32, #tpu.memory_space<vmem>>, vector<8x128xf32>
    %cst_148 = arith.constant dense<0.000000e+00> : vector<8x128xf32>
    %551 = tpu.matmul %536, %399, %cst_148 {dimension_numbers = #tpu.dot_dimension_numbers<[1], [0], [0], [1], [0, 0, 1, 1], [], []>} : vector<8x32xf32>, vector<32x128xf32>, vector<8x128xf32> -> vector<8x128xf32>
    %552 = arith.addf %550, %551 : vector<8x128xf32>
    %553 = vector.extract_strided_slice %552 {offsets = [0, 0], sizes = [8, 32], strides = [1, 1]} : vector<8x128xf32> to vector<8x32xf32>
    %554 = arith.negf %553 : vector<8x32xf32>
    %555 = math.exp %554 : vector<8x32xf32>
    %cst_149 = arith.constant 1.000000e+00 : f32
    %556 = vector.broadcast %cst_149 : f32 to vector<8x32xf32>
    %557 = arith.addf %556, %555 : vector<8x32xf32>
    %558 = arith.divf %556, %557 : vector<8x32xf32>
    %559 = vector.extract_strided_slice %552 {offsets = [0, 32], sizes = [8, 32], strides = [1, 1]} : vector<8x128xf32> to vector<8x32xf32>
    %560 = arith.negf %559 : vector<8x32xf32>
    %561 = math.exp %560 : vector<8x32xf32>
    %cst_150 = arith.constant 1.000000e+00 : f32
    %562 = vector.broadcast %cst_150 : f32 to vector<8x32xf32>
    %563 = arith.addf %562, %561 : vector<8x32xf32>
    %564 = arith.divf %562, %563 : vector<8x32xf32>
    %565 = vector.extract_strided_slice %552 {offsets = [0, 64], sizes = [8, 32], strides = [1, 1]} : vector<8x128xf32> to vector<8x32xf32>
    %566 = math.tanh %565 : vector<8x32xf32>
    %567 = vector.extract_strided_slice %552 {offsets = [0, 96], sizes = [8, 32], strides = [1, 1]} : vector<8x128xf32> to vector<8x32xf32>
    %568 = arith.negf %567 : vector<8x32xf32>
    %569 = math.exp %568 : vector<8x32xf32>
    %cst_151 = arith.constant 1.000000e+00 : f32
    %570 = vector.broadcast %cst_151 : f32 to vector<8x32xf32>
    %571 = arith.addf %570, %569 : vector<8x32xf32>
    %572 = arith.divf %570, %571 : vector<8x32xf32>
    %573 = arith.mulf %564, %533 : vector<8x32xf32>
    %574 = arith.mulf %558, %566 : vector<8x32xf32>
    %575 = arith.addf %573, %574 : vector<8x32xf32>
    %576 = math.tanh %575 : vector<8x32xf32>
    %577 = arith.mulf %572, %576 : vector<8x32xf32>
    %578 = vector.shape_cast %548 : vector<8x1xi1> to vector<8x1xi1>
    %579 = vector.broadcast %578 : vector<8x1xi1> to vector<8x32xi1>
    %580 = arith.select %579, %575, %533 : vector<8x32xi1>, vector<8x32xf32>
    %581 = vector.shape_cast %548 : vector<8x1xi1> to vector<8x1xi1>
    %582 = vector.broadcast %581 : vector<8x1xi1> to vector<8x32xi1>
    %583 = arith.select %582, %577, %536 : vector<8x32xi1>, vector<8x32xf32>
    %cst_152 = arith.constant 0.000000e+00 : f32
    %584 = vector.broadcast %cst_152 : f32 to vector<8x32xf32>
    %585 = vector.shape_cast %548 : vector<8x1xi1> to vector<8x1xi1>
    %586 = vector.broadcast %585 : vector<8x1xi1> to vector<8x32xi1>
    %587 = arith.select %586, %577, %584 : vector<8x32xi1>, vector<8x32xf32>
    %588 = arith.index_cast %544 : i32 to index
    %c0_153 = arith.constant 0 : index
    %589 = vector.load %arg9[%588, %c0_153] : memref<64x32xf32, #tpu.memory_space<vmem>>, vector<8x32xf32>
    tpu.vector_store %arg9[%588, %c0_153], %587 {strides = array<i32>} : memref<64x32xf32, #tpu.memory_space<vmem>>, vector<8x32xf32>,
    %c4_i32_154 = arith.constant 4 : i32
    %c8_i32_155 = arith.constant 8 : i32
    %590 = arith.muli %c4_i32_154, %c8_i32_155 : i32
    %591 = tpu.assume_multiple %590, 8 : i32
    %592 = arith.index_cast %591 : i32 to index
    %c0_156 = arith.constant 0 : index
    %593 = vector.load %arg2[%592, %c0_156] : memref<64x1xf32, #tpu.memory_space<vmem>>, vector<8x1xf32>
    %cst_157 = arith.constant 5.000000e-01 : f32
    %594 = vector.broadcast %cst_157 : f32 to vector<8x1xf32>
    %595 = arith.cmpf ogt, %593, %594 : vector<8x1xf32>
    %596 = arith.index_cast %591 : i32 to index
    %c0_158 = arith.constant 0 : index
    %597 = vector.load %arg12[%596, %c0_158] : memref<64x128xf32, #tpu.memory_space<vmem>>, vector<8x128xf32>
    %cst_159 = arith.constant dense<0.000000e+00> : vector<8x128xf32>
    %598 = tpu.matmul %583, %399, %cst_159 {dimension_numbers = #tpu.dot_dimension_numbers<[1], [0], [0], [1], [0, 0, 1, 1], [], []>} : vector<8x32xf32>, vector<32x128xf32>, vector<8x128xf32> -> vector<8x128xf32>
    %599 = arith.addf %597, %598 : vector<8x128xf32>
    %600 = vector.extract_strided_slice %599 {offsets = [0, 0], sizes = [8, 32], strides = [1, 1]} : vector<8x128xf32> to vector<8x32xf32>
    %601 = arith.negf %600 : vector<8x32xf32>
    %602 = math.exp %601 : vector<8x32xf32>
    %cst_160 = arith.constant 1.000000e+00 : f32
    %603 = vector.broadcast %cst_160 : f32 to vector<8x32xf32>
    %604 = arith.addf %603, %602 : vector<8x32xf32>
    %605 = arith.divf %603, %604 : vector<8x32xf32>
    %606 = vector.extract_strided_slice %599 {offsets = [0, 32], sizes = [8, 32], strides = [1, 1]} : vector<8x128xf32> to vector<8x32xf32>
    %607 = arith.negf %606 : vector<8x32xf32>
    %608 = math.exp %607 : vector<8x32xf32>
    %cst_161 = arith.constant 1.000000e+00 : f32
    %609 = vector.broadcast %cst_161 : f32 to vector<8x32xf32>
    %610 = arith.addf %609, %608 : vector<8x32xf32>
    %611 = arith.divf %609, %610 : vector<8x32xf32>
    %612 = vector.extract_strided_slice %599 {offsets = [0, 64], sizes = [8, 32], strides = [1, 1]} : vector<8x128xf32> to vector<8x32xf32>
    %613 = math.tanh %612 : vector<8x32xf32>
    %614 = vector.extract_strided_slice %599 {offsets = [0, 96], sizes = [8, 32], strides = [1, 1]} : vector<8x128xf32> to vector<8x32xf32>
    %615 = arith.negf %614 : vector<8x32xf32>
    %616 = math.exp %615 : vector<8x32xf32>
    %cst_162 = arith.constant 1.000000e+00 : f32
    %617 = vector.broadcast %cst_162 : f32 to vector<8x32xf32>
    %618 = arith.addf %617, %616 : vector<8x32xf32>
    %619 = arith.divf %617, %618 : vector<8x32xf32>
    %620 = arith.mulf %611, %580 : vector<8x32xf32>
    %621 = arith.mulf %605, %613 : vector<8x32xf32>
    %622 = arith.addf %620, %621 : vector<8x32xf32>
    %623 = math.tanh %622 : vector<8x32xf32>
    %624 = arith.mulf %619, %623 : vector<8x32xf32>
    %625 = vector.shape_cast %595 : vector<8x1xi1> to vector<8x1xi1>
    %626 = vector.broadcast %625 : vector<8x1xi1> to vector<8x32xi1>
    %627 = arith.select %626, %622, %580 : vector<8x32xi1>, vector<8x32xf32>
    %628 = vector.shape_cast %595 : vector<8x1xi1> to vector<8x1xi1>
    %629 = vector.broadcast %628 : vector<8x1xi1> to vector<8x32xi1>
    %630 = arith.select %629, %624, %583 : vector<8x32xi1>, vector<8x32xf32>
    %cst_163 = arith.constant 0.000000e+00 : f32
    %631 = vector.broadcast %cst_163 : f32 to vector<8x32xf32>
    %632 = vector.shape_cast %595 : vector<8x1xi1> to vector<8x1xi1>
    %633 = vector.broadcast %632 : vector<8x1xi1> to vector<8x32xi1>
    %634 = arith.select %633, %624, %631 : vector<8x32xi1>, vector<8x32xf32>
    %635 = arith.index_cast %591 : i32 to index
    %c0_164 = arith.constant 0 : index
    %636 = vector.load %arg9[%635, %c0_164] : memref<64x32xf32, #tpu.memory_space<vmem>>, vector<8x32xf32>
    tpu.vector_store %arg9[%635, %c0_164], %634 {strides = array<i32>} : memref<64x32xf32, #tpu.memory_space<vmem>>, vector<8x32xf32>,
    %c5_i32_165 = arith.constant 5 : i32
    %c8_i32_166 = arith.constant 8 : i32
    %637 = arith.muli %c5_i32_165, %c8_i32_166 : i32
    %638 = tpu.assume_multiple %637, 8 : i32
    %639 = arith.index_cast %638 : i32 to index
    %c0_167 = arith.constant 0 : index
    %640 = vector.load %arg2[%639, %c0_167] : memref<64x1xf32, #tpu.memory_space<vmem>>, vector<8x1xf32>
    %cst_168 = arith.constant 5.000000e-01 : f32
    %641 = vector.broadcast %cst_168 : f32 to vector<8x1xf32>
    %642 = arith.cmpf ogt, %640, %641 : vector<8x1xf32>
    %643 = arith.index_cast %638 : i32 to index
    %c0_169 = arith.constant 0 : index
    %644 = vector.load %arg12[%643, %c0_169] : memref<64x128xf32, #tpu.memory_space<vmem>>, vector<8x128xf32>
    %cst_170 = arith.constant dense<0.000000e+00> : vector<8x128xf32>
    %645 = tpu.matmul %630, %399, %cst_170 {dimension_numbers = #tpu.dot_dimension_numbers<[1], [0], [0], [1], [0, 0, 1, 1], [], []>} : vector<8x32xf32>, vector<32x128xf32>, vector<8x128xf32> -> vector<8x128xf32>
    %646 = arith.addf %644, %645 : vector<8x128xf32>
    %647 = vector.extract_strided_slice %646 {offsets = [0, 0], sizes = [8, 32], strides = [1, 1]} : vector<8x128xf32> to vector<8x32xf32>
    %648 = arith.negf %647 : vector<8x32xf32>
    %649 = math.exp %648 : vector<8x32xf32>
    %cst_171 = arith.constant 1.000000e+00 : f32
    %650 = vector.broadcast %cst_171 : f32 to vector<8x32xf32>
    %651 = arith.addf %650, %649 : vector<8x32xf32>
    %652 = arith.divf %650, %651 : vector<8x32xf32>
    %653 = vector.extract_strided_slice %646 {offsets = [0, 32], sizes = [8, 32], strides = [1, 1]} : vector<8x128xf32> to vector<8x32xf32>
    %654 = arith.negf %653 : vector<8x32xf32>
    %655 = math.exp %654 : vector<8x32xf32>
    %cst_172 = arith.constant 1.000000e+00 : f32
    %656 = vector.broadcast %cst_172 : f32 to vector<8x32xf32>
    %657 = arith.addf %656, %655 : vector<8x32xf32>
    %658 = arith.divf %656, %657 : vector<8x32xf32>
    %659 = vector.extract_strided_slice %646 {offsets = [0, 64], sizes = [8, 32], strides = [1, 1]} : vector<8x128xf32> to vector<8x32xf32>
    %660 = math.tanh %659 : vector<8x32xf32>
    %661 = vector.extract_strided_slice %646 {offsets = [0, 96], sizes = [8, 32], strides = [1, 1]} : vector<8x128xf32> to vector<8x32xf32>
    %662 = arith.negf %661 : vector<8x32xf32>
    %663 = math.exp %662 : vector<8x32xf32>
    %cst_173 = arith.constant 1.000000e+00 : f32
    %664 = vector.broadcast %cst_173 : f32 to vector<8x32xf32>
    %665 = arith.addf %664, %663 : vector<8x32xf32>
    %666 = arith.divf %664, %665 : vector<8x32xf32>
    %667 = arith.mulf %658, %627 : vector<8x32xf32>
    %668 = arith.mulf %652, %660 : vector<8x32xf32>
    %669 = arith.addf %667, %668 : vector<8x32xf32>
    %670 = math.tanh %669 : vector<8x32xf32>
    %671 = arith.mulf %666, %670 : vector<8x32xf32>
    %672 = vector.shape_cast %642 : vector<8x1xi1> to vector<8x1xi1>
    %673 = vector.broadcast %672 : vector<8x1xi1> to vector<8x32xi1>
    %674 = arith.select %673, %669, %627 : vector<8x32xi1>, vector<8x32xf32>
    %675 = vector.shape_cast %642 : vector<8x1xi1> to vector<8x1xi1>
    %676 = vector.broadcast %675 : vector<8x1xi1> to vector<8x32xi1>
    %677 = arith.select %676, %671, %630 : vector<8x32xi1>, vector<8x32xf32>
    %cst_174 = arith.constant 0.000000e+00 : f32
    %678 = vector.broadcast %cst_174 : f32 to vector<8x32xf32>
    %679 = vector.shape_cast %642 : vector<8x1xi1> to vector<8x1xi1>
    %680 = vector.broadcast %679 : vector<8x1xi1> to vector<8x32xi1>
    %681 = arith.select %680, %671, %678 : vector<8x32xi1>, vector<8x32xf32>
    %682 = arith.index_cast %638 : i32 to index
    %c0_175 = arith.constant 0 : index
    %683 = vector.load %arg9[%682, %c0_175] : memref<64x32xf32, #tpu.memory_space<vmem>>, vector<8x32xf32>
    tpu.vector_store %arg9[%682, %c0_175], %681 {strides = array<i32>} : memref<64x32xf32, #tpu.memory_space<vmem>>, vector<8x32xf32>,
    %c6_i32_176 = arith.constant 6 : i32
    %c8_i32_177 = arith.constant 8 : i32
    %684 = arith.muli %c6_i32_176, %c8_i32_177 : i32
    %685 = tpu.assume_multiple %684, 8 : i32
    %686 = arith.index_cast %685 : i32 to index
    %c0_178 = arith.constant 0 : index
    %687 = vector.load %arg2[%686, %c0_178] : memref<64x1xf32, #tpu.memory_space<vmem>>, vector<8x1xf32>
    %cst_179 = arith.constant 5.000000e-01 : f32
    %688 = vector.broadcast %cst_179 : f32 to vector<8x1xf32>
    %689 = arith.cmpf ogt, %687, %688 : vector<8x1xf32>
    %690 = arith.index_cast %685 : i32 to index
    %c0_180 = arith.constant 0 : index
    %691 = vector.load %arg12[%690, %c0_180] : memref<64x128xf32, #tpu.memory_space<vmem>>, vector<8x128xf32>
    %cst_181 = arith.constant dense<0.000000e+00> : vector<8x128xf32>
    %692 = tpu.matmul %677, %399, %cst_181 {dimension_numbers = #tpu.dot_dimension_numbers<[1], [0], [0], [1], [0, 0, 1, 1], [], []>} : vector<8x32xf32>, vector<32x128xf32>, vector<8x128xf32> -> vector<8x128xf32>
    %693 = arith.addf %691, %692 : vector<8x128xf32>
    %694 = vector.extract_strided_slice %693 {offsets = [0, 0], sizes = [8, 32], strides = [1, 1]} : vector<8x128xf32> to vector<8x32xf32>
    %695 = arith.negf %694 : vector<8x32xf32>
    %696 = math.exp %695 : vector<8x32xf32>
    %cst_182 = arith.constant 1.000000e+00 : f32
    %697 = vector.broadcast %cst_182 : f32 to vector<8x32xf32>
    %698 = arith.addf %697, %696 : vector<8x32xf32>
    %699 = arith.divf %697, %698 : vector<8x32xf32>
    %700 = vector.extract_strided_slice %693 {offsets = [0, 32], sizes = [8, 32], strides = [1, 1]} : vector<8x128xf32> to vector<8x32xf32>
    %701 = arith.negf %700 : vector<8x32xf32>
    %702 = math.exp %701 : vector<8x32xf32>
    %cst_183 = arith.constant 1.000000e+00 : f32
    %703 = vector.broadcast %cst_183 : f32 to vector<8x32xf32>
    %704 = arith.addf %703, %702 : vector<8x32xf32>
    %705 = arith.divf %703, %704 : vector<8x32xf32>
    %706 = vector.extract_strided_slice %693 {offsets = [0, 64], sizes = [8, 32], strides = [1, 1]} : vector<8x128xf32> to vector<8x32xf32>
    %707 = math.tanh %706 : vector<8x32xf32>
    %708 = vector.extract_strided_slice %693 {offsets = [0, 96], sizes = [8, 32], strides = [1, 1]} : vector<8x128xf32> to vector<8x32xf32>
    %709 = arith.negf %708 : vector<8x32xf32>
    %710 = math.exp %709 : vector<8x32xf32>
    %cst_184 = arith.constant 1.000000e+00 : f32
    %711 = vector.broadcast %cst_184 : f32 to vector<8x32xf32>
    %712 = arith.addf %711, %710 : vector<8x32xf32>
    %713 = arith.divf %711, %712 : vector<8x32xf32>
    %714 = arith.mulf %705, %674 : vector<8x32xf32>
    %715 = arith.mulf %699, %707 : vector<8x32xf32>
    %716 = arith.addf %714, %715 : vector<8x32xf32>
    %717 = math.tanh %716 : vector<8x32xf32>
    %718 = arith.mulf %713, %717 : vector<8x32xf32>
    %719 = vector.shape_cast %689 : vector<8x1xi1> to vector<8x1xi1>
    %720 = vector.broadcast %719 : vector<8x1xi1> to vector<8x32xi1>
    %721 = arith.select %720, %716, %674 : vector<8x32xi1>, vector<8x32xf32>
    %722 = vector.shape_cast %689 : vector<8x1xi1> to vector<8x1xi1>
    %723 = vector.broadcast %722 : vector<8x1xi1> to vector<8x32xi1>
    %724 = arith.select %723, %718, %677 : vector<8x32xi1>, vector<8x32xf32>
    %cst_185 = arith.constant 0.000000e+00 : f32
    %725 = vector.broadcast %cst_185 : f32 to vector<8x32xf32>
    %726 = vector.shape_cast %689 : vector<8x1xi1> to vector<8x1xi1>
    %727 = vector.broadcast %726 : vector<8x1xi1> to vector<8x32xi1>
    %728 = arith.select %727, %718, %725 : vector<8x32xi1>, vector<8x32xf32>
    %729 = arith.index_cast %685 : i32 to index
    %c0_186 = arith.constant 0 : index
    %730 = vector.load %arg9[%729, %c0_186] : memref<64x32xf32, #tpu.memory_space<vmem>>, vector<8x32xf32>
    tpu.vector_store %arg9[%729, %c0_186], %728 {strides = array<i32>} : memref<64x32xf32, #tpu.memory_space<vmem>>, vector<8x32xf32>,
    %c7_i32_187 = arith.constant 7 : i32
    %c8_i32_188 = arith.constant 8 : i32
    %731 = arith.muli %c7_i32_187, %c8_i32_188 : i32
    %732 = tpu.assume_multiple %731, 8 : i32
    %733 = arith.index_cast %732 : i32 to index
    %c0_189 = arith.constant 0 : index
    %734 = vector.load %arg2[%733, %c0_189] : memref<64x1xf32, #tpu.memory_space<vmem>>, vector<8x1xf32>
    %cst_190 = arith.constant 5.000000e-01 : f32
    %735 = vector.broadcast %cst_190 : f32 to vector<8x1xf32>
    %736 = arith.cmpf ogt, %734, %735 : vector<8x1xf32>
    %737 = arith.index_cast %732 : i32 to index
    %c0_191 = arith.constant 0 : index
    %738 = vector.load %arg12[%737, %c0_191] : memref<64x128xf32, #tpu.memory_space<vmem>>, vector<8x128xf32>
    %cst_192 = arith.constant dense<0.000000e+00> : vector<8x128xf32>
    %739 = tpu.matmul %724, %399, %cst_192 {dimension_numbers = #tpu.dot_dimension_numbers<[1], [0], [0], [1], [0, 0, 1, 1], [], []>} : vector<8x32xf32>, vector<32x128xf32>, vector<8x128xf32> -> vector<8x128xf32>
    %740 = arith.addf %738, %739 : vector<8x128xf32>
    %741 = vector.extract_strided_slice %740 {offsets = [0, 0], sizes = [8, 32], strides = [1, 1]} : vector<8x128xf32> to vector<8x32xf32>
    %742 = arith.negf %741 : vector<8x32xf32>
    %743 = math.exp %742 : vector<8x32xf32>
    %cst_193 = arith.constant 1.000000e+00 : f32
    %744 = vector.broadcast %cst_193 : f32 to vector<8x32xf32>
    %745 = arith.addf %744, %743 : vector<8x32xf32>
    %746 = arith.divf %744, %745 : vector<8x32xf32>
    %747 = vector.extract_strided_slice %740 {offsets = [0, 32], sizes = [8, 32], strides = [1, 1]} : vector<8x128xf32> to vector<8x32xf32>
    %748 = arith.negf %747 : vector<8x32xf32>
    %749 = math.exp %748 : vector<8x32xf32>
    %cst_194 = arith.constant 1.000000e+00 : f32
    %750 = vector.broadcast %cst_194 : f32 to vector<8x32xf32>
    %751 = arith.addf %750, %749 : vector<8x32xf32>
    %752 = arith.divf %750, %751 : vector<8x32xf32>
    %753 = vector.extract_strided_slice %740 {offsets = [0, 64], sizes = [8, 32], strides = [1, 1]} : vector<8x128xf32> to vector<8x32xf32>
    %754 = math.tanh %753 : vector<8x32xf32>
    %755 = vector.extract_strided_slice %740 {offsets = [0, 96], sizes = [8, 32], strides = [1, 1]} : vector<8x128xf32> to vector<8x32xf32>
    %756 = arith.negf %755 : vector<8x32xf32>
    %757 = math.exp %756 : vector<8x32xf32>
    %cst_195 = arith.constant 1.000000e+00 : f32
    %758 = vector.broadcast %cst_195 : f32 to vector<8x32xf32>
    %759 = arith.addf %758, %757 : vector<8x32xf32>
    %760 = arith.divf %758, %759 : vector<8x32xf32>
    %761 = arith.mulf %752, %721 : vector<8x32xf32>
    %762 = arith.mulf %746, %754 : vector<8x32xf32>
    %763 = arith.addf %761, %762 : vector<8x32xf32>
    %764 = math.tanh %763 : vector<8x32xf32>
    %765 = arith.mulf %760, %764 : vector<8x32xf32>
    %766 = vector.shape_cast %736 : vector<8x1xi1> to vector<8x1xi1>
    %767 = vector.broadcast %766 : vector<8x1xi1> to vector<8x32xi1>
    %768 = arith.select %767, %763, %721 : vector<8x32xi1>, vector<8x32xf32>
    %769 = vector.shape_cast %736 : vector<8x1xi1> to vector<8x1xi1>
    %770 = vector.broadcast %769 : vector<8x1xi1> to vector<8x32xi1>
    %771 = arith.select %770, %765, %724 : vector<8x32xi1>, vector<8x32xf32>
    %cst_196 = arith.constant 0.000000e+00 : f32
    %772 = vector.broadcast %cst_196 : f32 to vector<8x32xf32>
    %773 = vector.shape_cast %736 : vector<8x1xi1> to vector<8x1xi1>
    %774 = vector.broadcast %773 : vector<8x1xi1> to vector<8x32xi1>
    %775 = arith.select %774, %765, %772 : vector<8x32xi1>, vector<8x32xf32>
    %776 = arith.index_cast %732 : i32 to index
    %c0_197 = arith.constant 0 : index
    %777 = vector.load %arg9[%776, %c0_197] : memref<64x32xf32, #tpu.memory_space<vmem>>, vector<8x32xf32>
    tpu.vector_store %arg9[%776, %c0_197], %775 {strides = array<i32>} : memref<64x32xf32, #tpu.memory_space<vmem>>, vector<8x32xf32>,
    %c8_i32_198 = arith.constant 8 : i32
    %c1 = arith.constant 1 : index
    %c0_199 = arith.constant 0 : index
    %c0_200 = arith.constant 0 : index
    %778 = vector.load %arg10[%c1, %c0_199, %c0_200] : memref<2x8x32xf32, #tpu.memory_space<vmem>>, vector<1x8x32xf32>
    %779 = vector.shape_cast %778 : vector<1x8x32xf32> to vector<8x32xf32>
    %780 = vector.shape_cast %771 : vector<8x32xf32> to vector<1x8x32xf32>
    tpu.vector_store %arg10[%c1, %c0_199, %c0_200], %780 {strides = array<i32>} : memref<2x8x32xf32, #tpu.memory_space<vmem>>, vector<1x8x32xf32>,
    %c1_201 = arith.constant 1 : index
    %c0_202 = arith.constant 0 : index
    %c0_203 = arith.constant 0 : index
    %781 = vector.load %arg11[%c1_201, %c0_202, %c0_203] : memref<2x8x32xf32, #tpu.memory_space<vmem>>, vector<1x8x32xf32>
    %782 = vector.shape_cast %781 : vector<1x8x32xf32> to vector<8x32xf32>
    %783 = vector.shape_cast %768 : vector<8x32xf32> to vector<1x8x32xf32>
    tpu.vector_store %arg11[%c1_201, %c0_202, %c0_203], %783 {strides = array<i32>} : memref<2x8x32xf32, #tpu.memory_space<vmem>>, vector<1x8x32xf32>,
    return
  }
  func.func @transform_0(%arg0: i32) -> (i32, i32) {
    %c0_i32 = arith.constant 0 : i32
    %c0_i32_0 = arith.constant 0 : i32
    return %arg0, %c0_i32 : i32, i32
  }
  func.func @transform_1(%arg0: i32) -> (i32, i32) {
    %c0_i32 = arith.constant 0 : i32
    %c0_i32_0 = arith.constant 0 : i32
    return %arg0, %c0_i32 : i32, i32
  }
  func.func @transform_2(%arg0: i32) -> (i32, i32) {
    %c0_i32 = arith.constant 0 : i32
    %c0_i32_0 = arith.constant 0 : i32
    %c0_i32_1 = arith.constant 0 : i32
    return %c0_i32, %c0_i32_0 : i32, i32
  }
  func.func @transform_3(%arg0: i32) -> (i32, i32) {
    %c0_i32 = arith.constant 0 : i32
    %c0_i32_0 = arith.constant 0 : i32
    %c0_i32_1 = arith.constant 0 : i32
    return %c0_i32, %c0_i32_0 : i32, i32
  }
  func.func @transform_4(%arg0: i32) -> (i32, i32) {
    %c0_i32 = arith.constant 0 : i32
    %c0_i32_0 = arith.constant 0 : i32
    %c0_i32_1 = arith.constant 0 : i32
    return %c0_i32, %c0_i32_0 : i32, i32
  }
  func.func @transform_5(%arg0: i32) -> (i32, i32) {
    %c0_i32 = arith.constant 0 : i32
    %c0_i32_0 = arith.constant 0 : i32
    %c0_i32_1 = arith.constant 0 : i32
    return %c0_i32, %c0_i32_0 : i32, i32
  }
  func.func @transform_6(%arg0: i32) -> (i32, i32) {
    %c0_i32 = arith.constant 0 : i32
    %c0_i32_0 = arith.constant 0 : i32
    %c0_i32_1 = arith.constant 0 : i32
    return %c0_i32, %c0_i32_0 : i32, i32
  }
  func.func @transform_7(%arg0: i32) -> (i32, i32) {
    %c0_i32 = arith.constant 0 : i32
    %c0_i32_0 = arith.constant 0 : i32
    %c0_i32_1 = arith.constant 0 : i32
    return %c0_i32, %c0_i32_0 : i32, i32
  }
  func.func @transform_8(%arg0: i32) -> (i32, i32) {
    %c0_i32 = arith.constant 0 : i32
    %c0_i32_0 = arith.constant 0 : i32
    return %arg0, %c0_i32 : i32, i32
  }
  func.func @transform_9(%arg0: i32) -> (i32, i32, i32) {
    %c0_i32 = arith.constant 0 : i32
    %c0_i32_0 = arith.constant 0 : i32
    %c0_i32_1 = arith.constant 0 : i32
    return %arg0, %c0_i32, %c0_i32_0 : i32, i32, i32
  }
  func.func @transform_10(%arg0: i32) -> (i32, i32, i32) {
    %c0_i32 = arith.constant 0 : i32
    %c0_i32_0 = arith.constant 0 : i32
    %c0_i32_1 = arith.constant 0 : i32
    return %arg0, %c0_i32, %c0_i32_0 : i32, i32, i32
  }
}

</mosaic_0001>

<bundles_post_ra>
// kernel: tpu_custom_call.1
= control target key start
LH: loop header
LB: loop body
LE: loop exit
PB: predicated region body
PF: predicated region fallthrough
CT: control target
= control target key end

     0   :  { %s4470_s0 = inlined_call_operand.vmem [shape: f32[128,32], index: 0, kind: input, shape index: {}]   ;;  %s4471_s1 = inlined_call_operand.vmem [shape: f32[128,1], index: 1, kind: input, shape index: {}]   ;;  %s4472_s2 = inlined_call_operand.vmem [shape: f32[32,128], index: 2, kind: input, shape index: {}]   ;;  %s4473_s3 = inlined_call_operand.vmem [shape: f32[32,128], index: 3, kind: input, shape index: {}]   ;;  %s4474_s4 = inlined_call_operand.vmem [shape: f32[1,128], index: 4, kind: input, shape index: {}]   ;;  %s4475_s5 = inlined_call_operand.vmem [shape: f32[32,128], index: 5, kind: input, shape index: {}]   ;;  %s4476_s6 = inlined_call_operand.vmem [shape: f32[32,128], index: 6, kind: input, shape index: {}]   ;;  %s4477_s7 = inlined_call_operand.vmem [shape: f32[1,128], index: 7, kind: input, shape index: {}]   ;;  %s4478_s8 = inlined_call_operand.vmem [shape: f32[128,32], index: 8, kind: output, shape index: {0}]   ;;  %s4479_s9 = inlined_call_operand.hbm [shape: f32[4,8,32], index: 9, kind: output, shape index: {1}]   ;;  %s4480_s10 = inlined_call_operand.hbm [shape: f32[4,8,32], index: 10, kind: output, shape index: {2}]  }
   0x1   :  { %4485 = sst [smem:[#allocation9_spill]] %s4470_s0 }
   0x2   :  { %4486 = sst [smem:[#allocation10_spill]] %s4471_s1 }
   0x3   :  { %4487 = sst [smem:[#allocation11_spill]] %s4472_s2 }
   0x4   :  { %4488 = sst [smem:[#allocation12_spill]] %s4473_s3 }
   0x5   :  { %16 = vsyncpa [#allocation4], 0 }
   0x6   :  { %18 = vsyncpa [#allocation4 + $0x1], 0 }
   0x7   :  { %19 = vsyncpa [#allocation6], 0 }
   0x8   :  { %21 = vsyncpa [#allocation6 + $0x1], 0  ;;  %s3665_s13 = smov 0   ;;  %s3667_s14 = smov 0  }
   0x9   :  { %s3669_s15 = smov 0   ;;  %s3671_s16 = smov 0  }
   0xa LB: > { %s3686_s17 = sadd.s32 4294967295, %s3597_s16   ;;  %s2788_s18 = sadd.s32 4294967294, %s3597_s16   ;;  %s3597_s16 = sphi %s3671_s16, %s4500_s16   ;;  %s3593_s15 = sphi %s3669_s15, %s4499_s15   ;;  %s3589_s14 = sphi %s3667_s14, %s4498_s14   ;;  %s3585_s13 = sphi %s3665_s13, %s4497_s13  }
   0xb   : > { %s3690_s19 = sadd.s32 1, %s3597_s16   ;;  %s238_s20 = sadd.s32 1, %s3593_s15 }
   0xc   : > { %s235_s21 = ssub.s32 %s3597_s16, %s3690_s19  ;;  %p248_p0 = scmp.ne.s32.totalorder %s3593_s15, %s3589_s14 }
   0xd   : > { %p236_p1 = scmp.eq.s32.totalorder %s235_s21, 0  ;;  %p249_p2 = scmp.eq.s32.totalorder %s3686_s17, 1 }
   0xe   : > { %p254_p3 = scmp.ne.s32.totalorder %s3589_s14, %s3585_s13  ;;  %p255_p4 = scmp.eq.s32.totalorder %s2788_s18, 1 }
   0xf   : > { %s3701_s22 = scalar_select %p236_p1, %s3593_s15, %s238_s20  }
  0x10   : > { %p3703_p5 = por %p249_p2, %p248_p0  ;;  %p3707_p6 = por %p255_p4, %p254_p3 }
  0x11   : > { %p2791_p7 = scmp.ge.s32.totalorder %s3597_s16, 1  ;;  %p335_p8 = scmp.lt.s32.totalorder %s3597_s16, 3 }
  0x13   : > { %p336_p9 = pnand %p2791_p7, %p335_p8 }
  0x14   : > { %s4491_s2 = sld [smem:[#allocation11_spill]] (!%p336_p9)  ;;  %s4492_s3 = sld [smem:[#allocation12_spill]] (!%p336_p9)  ;;  %v3599_v4 = vmov (!%p336_p9), 0.0|0.0   ;;  %vm3600_vm0 = vmmov (!%p336_p9), 0   ;;  %v3601_v12 = vmov (!%p336_p9), 0.0   ;;  %vm427_vm1 = vcmask (!%p336_p9), 261120  }
  0x15   : > { %339 = sbr.rel (%p336_p9) target bundleno = 10608 (0x2970), region = 52  ;;  %s2794_s11 = sshll.u32 (!%p336_p9), %s3686_s17, 3  ;;  %3216 = vmatprep.subr.bf16.mxu1 (!%p336_p9), %v3599_v4  ;;  %3020 = vmatprep.mubr.msk.f32.mxu1 (!%p336_p9), %vm3600_vm0, %v3601_v12  ;;  %v3602_v17 = vmov (!%p336_p9), 0   ;;  %v3789_v19 = vld [vmem:[%s4474_s4] ss:$0 sm:$0xff] (!%p336_p9) }
  0x16   : > { %p389_p10 = scmp.lt.s32.totalorder (!%p336_p9), %s2794_s11, 15  ;;  %s4493_s0 = sld [smem:[#allocation9_spill]] (!%p336_p9)  ;;  %3373 = vset.pattern.permute.xlu1 (!%p336_p9), %v3602_v17  ;;  %3374 = vset.pattern.permute.xlu0 (!%p336_p9), %v3602_v17 }
  0x17   : > { %s4494_s1 = sld [smem:[#allocation10_spill]] (!%p336_p9)  ;;  %s4481_s29 = smov (!%p336_p9), 64  }
  0x18   : > { %s4483_s30 = smov (!%p336_p9), 32   ;;  %s3605_s28 = smov (!%p336_p9), 96  }
  0x19   : > { %s2886_s20 = sshll.u32 (!%p336_p9), %s3686_s17, 8 }
  0x1a   : > { %v416_v0 = vld [vmem:[%s4491_s2] sm:$0xff] (!%p336_p9)  ;;  %v417_v1 = vld [vmem:[%s4491_s2 + $0x8] sm:$0xff] (!%p336_p9)  ;;  %v418_v6 = vld [vmem:[%s4491_s2 + $0x10] sm:$0xff] (!%p336_p9) }
  0x1b   : > { %v565_v2 = vld [vmem:[%s4492_s3] sm:$0xff] (!%p336_p9)  ;;  %v3208_v3 = vpack.c.bf16 (!%p336_p9), %v417_v1, %v416_v0  ;;  %v566_v5 = vld [vmem:[%s4492_s3 + $0x8] sm:$0xff] (!%p336_p9)  ;;  %v419_v7 = vld [vmem:[%s4491_s2 + $0x18] sm:$0xff] (!%p336_p9) }
  0x1c   : > { %v3733_v8 = vpack.c.bf16 %v566_v5, %v565_v2  ;;  %v3212_v9 = vpack.c.bf16 %v419_v7, %v418_v6  ;;  %v567_v10 = vld [vmem:[%s4492_s3 + $0x10] sm:$0xff]  ;;  %v568_v11 = vld [vmem:[%s4492_s3 + $0x18] sm:$0xff]  ;;  %s4502_s11 = smov (!%p389_p10, %s2794_s11), 15 }
  0x1d   : > { %3209 = vmatprep.subr.bf16.mxu0 %v3208_v3  ;;  %s3745_s12 = sshll.u32 %s4502_s11, 3  ;;  %v3747_v13 = vpack.c.bf16 %v568_v11, %v567_v10 }
  0x1e   : > { %3211 = vmatpush3.bf16.msra.mxu0 %v3208_v3  ;;  %3218 = vmatpush3.bf16.msra.mxu1 %v3733_v8  ;;  %s3753_s21 = scalar_lea.vmem %s4493_s0, %s3745_s12  ;;  %s3777_s26 = scalar_lea.vmem %s4494_s1, %s3745_s12 }
  0x1f   : > { %3213 = vmatprep.subr.bf16.mxu0 %v3212_v9  ;;  %3219 = vmatprep.subr.bf16.mxu1 %v3599_v4  ;;  %v408_v14 = vld [vmem:[%s3753_s21] sm:$0xff]  ;;  %v409_v15 = vld [vmem:[%s3753_s21 + $0x8] sm:$0xff]  ;;  %s3801_s11 = scalar_lea.vmem %s4478_s8, %s3745_s12  ;;  %v410_v59 = vld [vmem:[%s3753_s21 + $0x10] sm:$0xff]  ;;  %s3606_s1 = smov [#allocation5]  }
  0x20   : > { %3000 = vmatprep.mubr.msk.f32.mxu0 %vm427_vm1, %v408_v14  ;;  %v569_v16 = vld [vmem:[%s3777_s26] sm:$0xff]  ;;  %v2810_v46 = vld [vmem:[%s3777_s26 + $0x8] sm:$0xff]  ;;  %v411_v60 = vld [vmem:[%s3753_s21 + $0x18] sm:$0xff]  ;;  %s3507_s2 = sshll.u32 %s3606_s1, 4  ;;  %s3508_s2 = int_to_ptr.vmem [resolvable:$false] %s3507_s2 }
  0x21   : > { %vm570_vm2 = vcmp.gt.f32.partialorder %v569_v16, 0.5  ;;  %vm684_vm4 = vcmp.gt.f32.partialorder %v2810_v46, 0.5  ;;  %v412_v61 = vld [vmem:[%s3753_s21 + $0x20] sm:$0xff]  ;;  %v413_v62 = vld [vmem:[%s3753_s21 + $0x28] sm:$0xff]  ;;  %v414_v63 = vld [vmem:[%s3753_s21 + $0x30] sm:$0xff]  ;;  %s3509_s3 = scalar_lea.vmem %s3508_s2, 512 }
  0x22   : > { %3215 = vmatpush3.bf16.msra.mxu0 %v3212_v9  ;;  %3221 = vmatpush3.bf16.msra.mxu1 %v3747_v13  ;;  %v3783_v18 = vsel %vm570_vm2, 1, %v3602_v17  ;;  %v3816_v48 = vsel %vm684_vm4, 1, %v3602_v17  ;;  %v415_v0 = vld [vmem:[%s3753_s21 + $0x38] sm:$0xff] }
  0x23   : > { %3228 = vmatprep.subr.bf16.mxu0 %v3599_v4  ;;  %3222 = vmatprep.subr.bf16.mxu1 %v3599_v4 }
  0x24   : > { %672 = vperm.xlu1 %3373, %v3783_v18  }
  0x25   : > { %3001 = vmatmul.mubr.msk.f32.vlgmr.msra.gmra.mrb[0].mxu0 %vm427_vm1, %v409_v15  ;;  %3021 = vmatmul.mubr.f32.vlgmr.msra.gmra.mrb[0].mxu1 %v3601_v12 }
  0x26   : > { %3230 = vmatpush3.bf16.msra.mxu0 %v3733_v8  ;;  %3224 = vmatpush3.bf16.msra.mxu1 %v3733_v8 }
  0x27   : > { %3031 = vmatprep.mubr.msk.f32.mxu1 %vm3600_vm0, %v3601_v12  ;;  %3225 = vmatprep.subr.bf16.mxu1 %v3599_v4 }
  0x28   : > { %3231 = vmatprep.subr.bf16.mxu0 %v3599_v4  ;;  %3003 = vmatprep.mubr.msk.f32.mxu0 %vm427_vm1, %v410_v59 }
  0x29   : > { %3004 = vmatmul.mubr.msk.f32.gmra.mrb[2].mxu0 %vm427_vm1, %v411_v60 }
  0x2a   : > { %3233 = vmatpush3.bf16.msra.mxu0 %v3747_v13  ;;  %3227 = vmatpush3.bf16.msra.mxu1 %v3747_v13 }
  0x2b   : > { %3240 = vmatprep.subr.bf16.mxu0 %v3599_v4  ;;  %3234 = vmatprep.subr.bf16.mxu1 %v3599_v4 }
  0x2c   : > { %3006 = vmatprep.mubr.msk.f32.mxu0 %vm427_vm1, %v412_v61 }
  0x2d   : > { %3007 = vmatmul.mubr.msk.f32.gmra.mrb[4].mxu0 %vm427_vm1, %v413_v62 }
  0x2e   : > { %3009 = vmatprep.mubr.msk.f32.mxu0 %vm427_vm1, %v414_v63 }
  0x31   : > { %3010 = vmatmul.mubr.msk.f32.gmra.mrb[6].mxu0 %vm427_vm1, %v415_v0 }
  0x32   : > { %3042 = vmatprep.mubr.msk.f32.mxu0 %vm3600_vm0, %v3601_v12 }
  0xa3   : > { %v673_v37 = vpop.permute.xlu1 %672 }
  0xa4   : > { %vm674_vm3 = vcmp.eq.s32.totalorder %v673_v37, 1 }
  0xf8   : > { %v3002_v20 = vpop.f32.mrb[0].mxu0  ;;  %v641_v22 = vpop.f32.mrb[0].mxu1 }
  0xf9   : > { %v518_v21 = vpop.f32.mrb[1].mxu0  ;;  %v3022_v24 = vpop.f32.mrb[1].mxu1  ;;  %v524_v42 = vadd.f32 %v3002_v20, %v3789_v19 }
  0xfa   : > { %v519_v23 = vadd.f32 %v3789_v19, %v518_v21  ;;  %v2814_v24 = vld [vmem:[%s3777_s26 + $0x10] sm:$0xff] }
  0xfb   : > { %vm800_vm6 = vcmp.gt.f32.partialorder %v2814_v24, 0.5 }
  0xfc   : > { %v645_v25 = vadd.f32 %v641_v22, %v519_v23  ;;  %v3005_v7 = vpop.f32.mrb[2].mxu0 }
  0xfd   : > { %v528_v9 = vpop.f32.mrb[3].mxu0 }
  0xfe   : > { %3375 = vtanh.f32 %v645_v25  ;;  %v2809_v27 = vmul.f32 -1.442695, %v645_v25  ;;  %v529_v20 = vadd.f32 %v3789_v19, %v528_v9 }
 0x100   : > { %3377 = vpow2.f32 %v2809_v27  ;;  %v3845_v10 = vpop.f32.mrb[4].mxu0 }
 0x101   : > { %v3847_v11 = vpop.f32.mrb[5].mxu0 }
 0x104   : > { %v3849_v14 = vpop.f32.mrb[6].mxu0 }
 0x105   : > { %v3851_v15 = vpop.f32.mrb[7].mxu0 }
 0x108   : > { %v3376_v26 = vpop.eup %3375 }
 0x109   : > { %655 = vrot.lane.b32.xlu0 %v3376_v26, %s4481_s29  ;;  %v3864_v26 = vsel %vm800_vm6, 1, %v3602_v17 }
 0x10a   : > { %v3378_v28 = vpop.eup %3377 }
 0x10b   : > { %v649_v29 = vadd.f32 1.0, %v3378_v28 }
 0x10d   : > { %3379 = vrcp.f32 %v649_v29 }
 0x117   : > { %v3380_v30 = vpop.eup %3379 }
 0x118   : > { %v653_v33 = vmul.f32 0.0, %v3380_v30 }
 0x17b   : > { %v656_v31 = vpop.permute.xlu0 %655 }
 0x17c   : > { %v658_v32 = vmul.f32 %v3380_v30, %v656_v31 }
 0x17e   : > { %660 = vrot.lane.b32.xlu0 %v658_v32, %s4483_s30 }
 0x1f0   : > { %v661_v34 = vpop.permute.xlu0 %660 }
 0x1f1   : > { %v663_v35 = vadd.f32 %v661_v34, %v653_v33 }
 0x1f3   : > { %3381 = vtanh.f32 %v663_v35  ;;  %v675_v55 = vsel %vm674_vm3, %v663_v35, 0.0 }
 0x1fd   : > { %v3382_v36 = vpop.eup %3381 }
 0x1fe   : > { %666 = vrot.lane.b32.xlu1 %v3382_v36, %s4481_s29 }
 0x270   : > { %v667_v38 = vpop.permute.xlu1 %666 }
 0x271   : > { %v669_v39 = vmul.f32 %v3380_v30, %v667_v38 }
 0x273   : > { %v676_v40 = vsel %vm674_vm3, %v669_v39, 0.0 }
 0x274   : > { %678 = vrot.lane.b32.xlu0 %v676_v40, %s4483_s30 }
 0x2e6   : > { %v679_v41 = vpop.permute.xlu0 %678 }
 0x2e7   : > { %681 = vst.msk [vmem:[%s3801_s11] sm:$0xff] %vm427_vm1, %v679_v41  ;;  %3032 = vmatmul.mubr.msk.f32.vlgmr.msra.gmra.mrb[2].mxu1 %vm427_vm1, %v679_v41 }
 0x2e8   : > { %3236 = vmatpush3.bf16.msra.mxu1 %v3733_v8  ;;  %3053 = vmatprep.mubr.msk.f32.mxu1 %vm3600_vm0, %v3601_v12 }
 0x2e9   : > { %3237 = vmatprep.subr.bf16.mxu1 %v3599_v4 }
 0x2ec   : > { %3239 = vmatpush3.bf16.msra.mxu1 %v3747_v13 }
 0x2ed   : > { %3246 = vmatprep.subr.bf16.mxu1 %v3599_v4 }
 0x3ba   : > { %v755_v43 = vpop.f32.mrb[2].mxu1 }
 0x3bb   : > { %v759_v44 = vadd.f32 %v755_v43, %v524_v42  ;;  %v3033_v45 = vpop.f32.mrb[3].mxu1  ;;  %v534_v43 = vadd.f32 %v3005_v7, %v3789_v19 }
 0x3bd   : > { %3383 = vtanh.f32 %v759_v44  ;;  %v2812_v49 = vmul.f32 -1.442695, %v759_v44 }
 0x3bf   : > { %3385 = vpow2.f32 %v2812_v49 }
 0x3c7   : > { %v3384_v47 = vpop.eup %3383 }
 0x3c8   : > { %769 = vrot.lane.b32.xlu1 %v3384_v47, %s4481_s29  ;;  %v2818_v47 = vld [vmem:[%s3777_s26 + $0x18] sm:$0xff] }
 0x3c9   : > { %v3386_v50 = vpop.eup %3385  ;;  %vm919_vm8 = vcmp.gt.f32.partialorder %v2818_v47, 0.5 }
 0x3ca   : > { %v763_v51 = vadd.f32 1.0, %v3386_v50  ;;  %v3891_v50 = vsel %vm919_vm8, 1, %v3602_v17 }
 0x3cc   : > { %786 = vperm.xlu1 %3373, %v3816_v48   ;;  %3387 = vrcp.f32 %v763_v51 }
 0x3d6   : > { %v3388_v52 = vpop.eup %3387 }
 0x3d7   : > { %v767_v56 = vmul.f32 %v3388_v52, %v675_v55 }
 0x43a   : > { %v770_v53 = vpop.permute.xlu1 %769 }
 0x43b   : > { %v772_v54 = vmul.f32 %v3388_v52, %v770_v53 }
 0x43d   : > { %774 = vrot.lane.b32.xlu0 %v772_v54, %s4483_s30 }
 0x44b   : > { %v3836_v2 = vpop.permute.xlu1 %786 }
 0x44c   : > { %vm788_vm5 = vcmp.eq.s32.totalorder %v3836_v2, 1 }
 0x4af   : > { %v775_v57 = vpop.permute.xlu0 %774 }
 0x4b0   : > { %v777_v58 = vadd.f32 %v775_v57, %v767_v56 }
 0x4b2   : > { %3389 = vtanh.f32 %v777_v58  ;;  %v789_v33 = vsel %vm788_vm5, %v777_v58, %v675_v55 }
 0x4bc   : > { %v3390_v1 = vpop.eup %3389 }
 0x4bd   : > { %780 = vrot.lane.b32.xlu0 %v3390_v1, %s4481_s29 }
 0x52f   : > { %v781_v3 = vpop.permute.xlu0 %780 }
 0x530   : > { %v3838_v5 = vmul.f32 %v3388_v52, %v781_v3 }
 0x532   : > { %v790_v6 = vsel %vm788_vm5, %v3838_v5, %v676_v40 }
 0x533   : > { %804 = vrot.lane.b32.xlu1 %v790_v6, %s4483_s30 }
 0x5a5   : > { %v805_v16 = vpop.permute.xlu1 %804 }
 0x5a6   : > { %3043 = vmatmul.mubr.msk.f32.vlgmr.msra.gmra.mrb[8].mxu0 %vm427_vm1, %v805_v16 }
 0x5a7   : > { %3242 = vmatpush3.bf16.msra.mxu0 %v3733_v8  ;;  %3064 = vmatprep.mubr.msk.f32.mxu0 %vm3600_vm0, %v3601_v12 }
 0x5a8   : > { %3243 = vmatprep.subr.bf16.mxu0 %v3599_v4 }
 0x5ab   : > { %3245 = vmatpush3.bf16.msra.mxu0 %v3747_v13 }
 0x5ac   : > { %3252 = vmatprep.subr.bf16.mxu0 %v3599_v4 }
 0x679   : > { %v874_v21 = vpop.f32.mrb[8].mxu0 }
 0x67a   : > { %v878_v22 = vadd.f32 %v874_v21, %v529_v20  ;;  %v3044_v23 = vpop.f32.mrb[9].mxu0  ;;  %v2822_v20 = vld [vmem:[%s3777_s26 + $0x20] sm:$0xff] }
 0x67b   : > { %vm1038_vm10 = vcmp.gt.f32.partialorder %v2822_v20, 0.5 }
 0x67c   : > { %3391 = vtanh.f32 %v878_v22  ;;  %v2816_v27 = vmul.f32 -1.442695, %v878_v22  ;;  %v3918_v22 = vsel %vm1038_vm10, 1, %v3602_v17 }
 0x67e   : > { %3393 = vpow2.f32 %v2816_v27 }
 0x686   : > { %v3392_v25 = vpop.eup %3391 }
 0x687   : > { %888 = vrot.lane.b32.xlu0 %v3392_v25, %s4481_s29 }
 0x688   : > { %v3394_v28 = vpop.eup %3393 }
 0x689   : > { %v882_v29 = vadd.f32 1.0, %v3394_v28 }
 0x68b   : > { %905 = vperm.xlu0 %3374, %v3864_v26   ;;  %3395 = vrcp.f32 %v882_v29 }
 0x695   : > { %v3396_v30 = vpop.eup %3395 }
 0x696   : > { %v886_v34 = vmul.f32 %v3396_v30, %v789_v33 }
 0x6f9   : > { %v889_v31 = vpop.permute.xlu0 %888 }
 0x6fa   : > { %v891_v32 = vmul.f32 %v3396_v30, %v889_v31 }
 0x6fc   : > { %893 = vrot.lane.b32.xlu1 %v891_v32, %s4483_s30 }
 0x70a   : > { %v3871_v38 = vpop.permute.xlu0 %905 }
 0x70b   : > { %vm907_vm7 = vcmp.eq.s32.totalorder %v3871_v38, 1 }
 0x76e   : > { %v894_v35 = vpop.permute.xlu1 %893 }
 0x76f   : > { %v896_v36 = vadd.f32 %v894_v35, %v886_v34 }
 0x771   : > { %3397 = vtanh.f32 %v896_v36  ;;  %v908_v57 = vsel %vm907_vm7, %v896_v36, %v789_v33 }
 0x77b   : > { %v3398_v37 = vpop.eup %3397 }
 0x77c   : > { %899 = vrot.lane.b32.xlu1 %v3398_v37, %s4481_s29 }
 0x7ee   : > { %v900_v39 = vpop.permute.xlu1 %899 }
 0x7ef   : > { %v3873_v40 = vmul.f32 %v3396_v30, %v900_v39 }
 0x7f1   : > { %v909_v41 = vsel %vm907_vm7, %v3873_v40, %v790_v6  ;;  %v539_v6 = vadd.f32 %v3789_v19, %v3847_v11 }
 0x7f2   : > { %923 = vrot.lane.b32.xlu1 %v909_v41, %s4483_s30 }
 0x864   : > { %v924_v42 = vpop.permute.xlu1 %923 }
 0x865   : > { %3054 = vmatmul.mubr.msk.f32.vlgmr.msra.gmra.mrb[4].mxu1 %vm427_vm1, %v924_v42 }
 0x866   : > { %3248 = vmatpush3.bf16.msra.mxu1 %v3733_v8  ;;  %3075 = vmatprep.mubr.msk.f32.mxu1 %vm3600_vm0, %v3601_v12 }
 0x867   : > { %3249 = vmatprep.subr.bf16.mxu1 %v3599_v4 }
 0x86a   : > { %3251 = vmatpush3.bf16.msra.mxu1 %v3747_v13 }
 0x86b   : > { %3258 = vmatprep.subr.bf16.mxu1 %v3599_v4 }
 0x938   : > { %v993_v44 = vpop.f32.mrb[4].mxu1 }
 0x939   : > { %v997_v45 = vadd.f32 %v993_v44, %v534_v43  ;;  %v3055_v46 = vpop.f32.mrb[5].mxu1 }
 0x93b   : > { %3399 = vtanh.f32 %v997_v45  ;;  %v2820_v51 = vmul.f32 -1.442695, %v997_v45  ;;  %v2826_v45 = vld [vmem:[%s3777_s26 + $0x28] sm:$0xff] }
 0x93c   : > { %vm1157_vm12 = vcmp.gt.f32.partialorder %v2826_v45, 0.5  ;;  %v1678_v45 = vld [vmem:[%s4476_s6] sm:$0xff] }
 0x93d   : > { %3401 = vpow2.f32 %v2820_v51 }
 0x945   : > { %v3400_v49 = vpop.eup %3399 }
 0x946   : > { %1007 = vrot.lane.b32.xlu0 %v3400_v49, %s4481_s29 }
 0x947   : > { %v3402_v52 = vpop.eup %3401 }
 0x948   : > { %v1001_v53 = vadd.f32 1.0, %v3402_v52 }
 0x94a   : > { %1024 = vperm.xlu0 %3374, %v3891_v50   ;;  %3403 = vrcp.f32 %v1001_v53 }
 0x954   : > { %v3404_v54 = vpop.eup %3403 }
 0x955   : > { %v1005_v58 = vmul.f32 %v3404_v54, %v908_v57 }
 0x9b8   : > { %v1008_v55 = vpop.permute.xlu0 %1007 }
 0x9b9   : > { %v1010_v56 = vmul.f32 %v3404_v54, %v1008_v55 }
 0x9bb   : > { %1012 = vrot.lane.b32.xlu1 %v1010_v56, %s4483_s30 }
 0x9c9   : > { %v3898_v62 = vpop.permute.xlu0 %1024 }
 0x9ca   : > { %vm1026_vm9 = vcmp.eq.s32.totalorder %v3898_v62, 1 }
 0xa2d   : > { %v1013_v59 = vpop.permute.xlu1 %1012 }
 0xa2e   : > { %v1015_v60 = vadd.f32 %v1013_v59, %v1005_v58 }
 0xa30   : > { %3405 = vtanh.f32 %v1015_v60  ;;  %v1027_v29 = vsel %vm1026_vm9, %v1015_v60, %v908_v57 }
 0xa3a   : > { %v3406_v61 = vpop.eup %3405 }
 0xa3b   : > { %1018 = vrot.lane.b32.xlu1 %v3406_v61, %s4481_s29 }
 0xaad   : > { %v1019_v63 = vpop.permute.xlu1 %1018 }
 0xaae   : > { %v3900_v0 = vmul.f32 %v3404_v54, %v1019_v63 }
 0xab0   : > { %v1028_v1 = vsel %vm1026_vm9, %v3900_v0, %v909_v41  ;;  %v544_v41 = vadd.f32 %v3845_v10, %v3789_v19 }
 0xab1   : > { %1042 = vrot.lane.b32.xlu0 %v1028_v1, %s4483_s30 }
 0xb23   : > { %v1043_v3 = vpop.permute.xlu0 %1042 }
 0xb24   : > { %3065 = vmatmul.mubr.msk.f32.vlgmr.msra.gmra.mrb[10].mxu0 %vm427_vm1, %v1043_v3  ;;  %v549_v3 = vadd.f32 %v3789_v19, %v3851_v15  ;;  %v1531_v15 = vld [vmem:[%s4475_s5 + $0x8] sm:$0xff] }
 0xb25   : > { %3254 = vmatpush3.bf16.msra.mxu0 %v3733_v8  ;;  %3086 = vmatprep.mubr.msk.f32.mxu0 %vm3600_vm0, %v3601_v12 }
 0xb26   : > { %3255 = vmatprep.subr.bf16.mxu0 %v3599_v4 }
 0xb29   : > { %3257 = vmatpush3.bf16.msra.mxu0 %v3747_v13 }
 0xbf7   : > { %v1112_v7 = vpop.f32.mrb[10].mxu0 }
 0xbf8   : > { %v1116_v9 = vadd.f32 %v1112_v7, %v539_v6  ;;  %v3066_v16 = vpop.f32.mrb[11].mxu0 }
 0xbf9   : > { %v2830_v16 = vld [vmem:[%s3777_s26 + $0x30] sm:$0xff] }
 0xbfa   : > { %3407 = vtanh.f32 %v1116_v9  ;;  %v2824_v23 = vmul.f32 -1.442695, %v1116_v9  ;;  %vm1276_vm14 = vcmp.gt.f32.partialorder %v2830_v16, 0.5 }
 0xbfc   : > { %3409 = vpow2.f32 %v2824_v23  ;;  %v1530_v23 = vld [vmem:[%s4475_s5] sm:$0xff] }
 0xc04   : > { %v3408_v21 = vpop.eup %3407 }
 0xc05   : > { %1126 = vrot.lane.b32.xlu1 %v3408_v21, %s4481_s29  ;;  %v3973_v21 = vsel %vm1276_vm14, 1, %v3602_v17 }
 0xc06   : > { %v3410_v24 = vpop.eup %3409 }
 0xc07   : > { %v1120_v25 = vadd.f32 1.0, %v3410_v24  ;;  %v3264_v24 = vpack.c.bf16 %v1531_v15, %v1530_v23 }
 0xc09   : > { %1143 = vperm.xlu1 %3373, %v3918_v22   ;;  %3411 = vrcp.f32 %v1120_v25  ;;  %v791_v25 = vsel %vm788_vm5, %v3838_v5, 0.0  ;;  %3265 = vmatprep.subr.bf16.mxu0 %v3264_v24 }
 0xc13   : > { %v3412_v11 = vpop.eup %3411 }
 0xc14   : > { %v1124_v30 = vmul.f32 %v3412_v11, %v1027_v29 }
 0xc77   : > { %v1127_v27 = vpop.permute.xlu1 %1126 }
 0xc78   : > { %v1129_v28 = vmul.f32 %v3412_v11, %v1127_v27  ;;  %v1533_v27 = vld [vmem:[%s4475_s5 + $0x18] sm:$0xff] }
 0xc7a   : > { %1131 = vrot.lane.b32.xlu0 %v1129_v28, %s4483_s30 }
 0xc88   : > { %v3925_v34 = vpop.permute.xlu1 %1143 }
 0xc89   : > { %vm1145_vm11 = vcmp.eq.s32.totalorder %v3925_v34, 1 }
 0xcec   : > { %v1132_v31 = vpop.permute.xlu0 %1131 }
 0xced   : > { %v1134_v32 = vadd.f32 %v1132_v31, %v1124_v30 }
 0xcef   : > { %3413 = vtanh.f32 %v1134_v32  ;;  %v1146_v53 = vsel %vm1145_vm11, %v1134_v32, %v1027_v29 }
 0xcf9   : > { %v3414_v33 = vpop.eup %3413 }
 0xcfa   : > { %1137 = vrot.lane.b32.xlu0 %v3414_v33, %s4481_s29 }
 0xd6c   : > { %v1138_v35 = vpop.permute.xlu0 %1137 }
 0xd6d   : > { %v3927_v36 = vmul.f32 %v3412_v11, %v1138_v35  ;;  %v1532_v11 = vld [vmem:[%s4475_s5 + $0x10] sm:$0xff] }
 0xd6e   : > { %v3268_v28 = vpack.c.bf16 %v1533_v27, %v1532_v11 }
 0xd6f   : > { %v1147_v37 = vsel %vm1145_vm11, %v3927_v36, %v1028_v1  ;;  %v1522_v1 = vld [vmem:[%s3801_s11] sm:$0xff] }
 0xd70   : > { %1161 = vrot.lane.b32.xlu1 %v1147_v37, %s4483_s30 }
 0xde2   : > { %v1162_v39 = vpop.permute.xlu1 %1161 }
 0xde3   : > { %3076 = vmatmul.mubr.msk.f32.vlgmr.msra.gmra.mrb[6].mxu1 %vm427_vm1, %v1162_v39 }
 0xde4   : > { %3260 = vmatpush3.bf16.msra.mxu1 %v3733_v8  ;;  %3097 = vmatprep.mubr.msk.f32.mxu1 %vm3600_vm0, %v3601_v12  ;;  %v3946_v8 = vsel %vm1157_vm12, 1, %v3602_v17 }
 0xde5   : > { %3261 = vmatprep.subr.bf16.mxu1 %v3599_v4 }
 0xde8   : > { %3263 = vmatpush3.bf16.msra.mxu1 %v3747_v13 }
 0xde9   : > { %3272 = vmatprep.subr.bf16.mxu1 %v3599_v4 }
 0xeb6   : > { %v1231_v42 = vpop.f32.mrb[6].mxu1 }
 0xeb7   : > { %v1235_v43 = vadd.f32 %v1231_v42, %v544_v41  ;;  %v3077_v44 = vpop.f32.mrb[7].mxu1 }
 0xeb9   : > { %3415 = vtanh.f32 %v1235_v43  ;;  %v2828_v13 = vmul.f32 -1.442695, %v1235_v43 }
 0xebb   : > { %3417 = vpow2.f32 %v2828_v13 }
 0xec3   : > { %v3416_v46 = vpop.eup %3415 }
 0xec4   : > { %1245 = vrot.lane.b32.xlu0 %v3416_v46, %s4481_s29  ;;  %v1679_v46 = vld [vmem:[%s4476_s6 + $0x8] sm:$0xff] }
 0xec5   : > { %v3418_v47 = vpop.eup %3417  ;;  %v4015_v13 = vpack.c.bf16 %v1679_v46, %v1678_v45  ;;  %v910_v46 = vsel %vm907_vm7, %v3873_v40, 0.0 }
 0xec6   : > { %v1239_v49 = vadd.f32 1.0, %v3418_v47  ;;  %v1680_v47 = vld [vmem:[%s4476_s6 + $0x10] sm:$0xff] }
 0xec8   : > { %1262 = vperm.xlu0 %3374, %v3946_v8   ;;  %3419 = vrcp.f32 %v1239_v49  ;;  %v1681_v49 = vld [vmem:[%s4476_s6 + $0x18] sm:$0xff] }
 0xed2   : > { %v3420_v10 = vpop.eup %3419 }
 0xed3   : > { %v1243_v54 = vmul.f32 %v3420_v10, %v1146_v53 }
 0xf36   : > { %v1246_v51 = vpop.permute.xlu0 %1245 }
 0xf37   : > { %v1248_v52 = vmul.f32 %v3420_v10, %v1246_v51 }
 0xf39   : > { %1250 = vrot.lane.b32.xlu1 %v1248_v52, %s4483_s30 }
 0xf47   : > { %v3953_v58 = vpop.permute.xlu0 %1262 }
 0xf48   : > { %vm1264_vm13 = vcmp.eq.s32.totalorder %v3953_v58, 1 }
 0xfab   : > { %v1251_v55 = vpop.permute.xlu1 %1250 }
 0xfac   : > { %v1253_v56 = vadd.f32 %v1251_v55, %v1243_v54 }
 0xfae   : > { %3421 = vtanh.f32 %v1253_v56  ;;  %v4002_v39 = vsel %vm1264_vm13, %v1253_v56, %v1146_v53 }
 0xfb8   : > { %v3422_v57 = vpop.eup %3421 }
 0xfb9   : > { %1256 = vrot.lane.b32.xlu1 %v3422_v57, %s4481_s29  ;;  %v554_v57 = vadd.f32 %v3849_v14, %v3789_v19 }
0x102b   : > { %v1257_v59 = vpop.permute.xlu1 %1256 }
0x102c   : > { %v3955_v60 = vmul.f32 %v3420_v10, %v1257_v59  ;;  %v4025_v10 = vpack.c.bf16 %v1681_v49, %v1680_v47  ;;  %v1148_v47 = vsel %vm1145_vm11, %v3927_v36, 0.0 }
0x102e   : > { %v3961_v61 = vsel %vm1264_vm13, %v3955_v60, %v1147_v37 }
0x102f   : > { %1280 = vrot.lane.b32.xlu0 %v3961_v61, %s4483_s30 }
0x10a1   : > { %v1281_v63 = vpop.permute.xlu0 %1280 }
0x10a2   : > { %3087 = vmatmul.mubr.msk.f32.vlgmr.msra.gmra.mrb[12].mxu0 %vm427_vm1, %v1281_v63 }
0x10a3   : > { %3108 = vmatprep.mubr.msk.f32.mxu0 %vm427_vm1, %v1522_v1  ;;  %3267 = vmatpush3.bf16.msra.mxu0 %v3264_v24  ;;  %v4061_v1 = vld [vmem:[%s4477_s7] ss:$0 sm:$0xff] }
0x10a4   : > { %3269 = vmatprep.subr.bf16.mxu0 %v3268_v28 }
0x10a7   : > { %3271 = vmatpush3.bf16.msra.mxu0 %v3268_v28 }
0x10a8   : > { %3284 = vmatprep.subr.bf16.mxu0 %v3599_v4 }
0x1175   : > { %v1350_v6 = vpop.f32.mrb[12].mxu0 }
0x1176   : > { %v1354_v7 = vadd.f32 %v1350_v6, %v549_v3  ;;  %v3088_v9 = vpop.f32.mrb[13].mxu0 }
0x1178   : > { %3423 = vtanh.f32 %v1354_v7  ;;  %v2832_v2 = vmul.f32 -1.442695, %v1354_v7 }
0x117a   : > { %3425 = vpow2.f32 %v2832_v2 }
0x1182   : > { %v3424_v20 = vpop.eup %3423 }
0x1183   : > { %1364 = vrot.lane.b32.xlu1 %v3424_v20, %s4481_s29  ;;  %s4495_s29 = smov 64  }
0x1184   : > { %v3426_v5 = vpop.eup %3425 }
0x1185   : > { %v1358_v29 = vadd.f32 1.0, %v3426_v5 }
0x1187   : > { %1381 = vperm.xlu1 %3373, %v3973_v21   ;;  %3427 = vrcp.f32 %v1358_v29 }
0x118b   : > { %793 = vrot.lane.b32.xlu1 %v791_v25, %s4483_s30 }
0x1191   : > { %v3428_v30 = vpop.eup %3427 }
0x1192   : > { %v1362_v41 = vmul.f32 %v3428_v30, %v4002_v39 }
0x11f5   : > { %v1365_v31 = vpop.permute.xlu1 %1364 }
0x11f6   : > { %v1367_v32 = vmul.f32 %v3428_v30, %v1365_v31 }
0x11f8   : > { %1369 = vrot.lane.b32.xlu0 %v1367_v32, %s4483_s30  ;;  %s4496_s30 = smov 32  }
0x1206   : > { %v3994_v33 = vpop.permute.xlu1 %1381 }
0x1207   : > { %vm1383_vm15 = vcmp.eq.s32.totalorder %v3994_v33, 1 }
0x120a   : > { %v794_v35 = vpop.permute.xlu1 %793 }
0x120b   : > { %2813 = vst.msk [vmem:[%s3801_s11 + $0x8] sm:$0xff] %vm427_vm1, %v794_v35  ;;  %v2834_v35 = vld [vmem:[%s3777_s26 + $0x38] sm:$0xff]  ;;  %s4326_s26 = sand.u32 1, %s3589_s14  }
0x120c   : > { %vm1395_vm3 = vcmp.gt.f32.partialorder %v2834_v35, 0.5  ;;  %s2792_s25 = sshll.u32 %s4326_s26, 4 }
0x120d   : > { %v4087_v45 = vsel %vm1395_vm3, 1, %v3602_v17  ;;  %s4331_s27 = scalar_lea.vmem [#allocation3], %s2792_s25 }
0x1212   : > { %v1523_v37 = vld [vmem:[%s3801_s11 + $0x8] sm:$0xff] }
0x1213   : > { %3109 = vmatmul.mubr.msk.f32.vlgmr.msra.gmra.mrb[14].mxu0 %vm427_vm1, %v1523_v37 }
0x1214   : > { %3286 = vmatpush3.bf16.msra.mxu0 %v4015_v13 }
0x1215   : > { %3287 = vmatprep.subr.bf16.mxu0 %v3599_v4 }
0x1218   : > { %3289 = vmatpush3.bf16.msra.mxu0 %v4025_v10 }
0x1219   : > { %3296 = vmatprep.subr.bf16.mxu0 %v3599_v4 }
0x126a   : > { %v1370_v42 = vpop.permute.xlu0 %1369 }
0x126b   : > { %v4005_v43 = vadd.f32 %v1370_v42, %v1362_v41 }
0x126d   : > { %3429 = vtanh.f32 %v4005_v43 }
0x1277   : > { %v3430_v44 = vpop.eup %3429 }
0x1278   : > { %1375 = vrot.lane.b32.xlu0 %v3430_v44, %s4495_s29 }
0x12e6   : > { %v4027_v51 = vpop.f32.mrb[14].mxu0 }
0x12e7   : > { %v1631_v52 = vpop.f32.mrb[15].mxu0 }
0x12e8   : > { %v1632_v3 = vadd.f32 %v4061_v1, %v1631_v52 }
0x12ea   : > { %v1376_v53 = vpop.permute.xlu0 %1375 }
0x12eb   : > { %v4031_v54 = vmul.f32 %v3428_v30, %v1376_v53 }
0x12ed   : > { %v4038_v55 = vsel %vm1383_vm15, %v4031_v54, %v3961_v61  ;;  %v1386_v17 = vsel %vm1383_vm15, %v4031_v54, 0.0  ;;  %v1637_v54 = vadd.f32 %v4027_v51, %v4061_v1 }
0x12ee   : > { %1399 = vrot.lane.b32.xlu0 %v4038_v55, %s4496_s30 }
0x1360   : > { %v1400_v56 = vpop.permute.xlu0 %1399 }
0x1361   : > { %3098 = vmatmul.mubr.msk.f32.vlgmr.msra.gmra.mrb[8].mxu1 %vm427_vm1, %v1400_v56 }
0x1362   : > { %3274 = vmatpush3.bf16.msra.mxu1 %v4015_v13  ;;  %3128 = vmatprep.mubr.msk.f32.mxu1 %vm3600_vm0, %v3601_v12 }
0x1363   : > { %3275 = vmatprep.subr.bf16.mxu1 %v3599_v4 }
0x1366   : > { %3277 = vmatpush3.bf16.msra.mxu1 %v4025_v10 }
0x1367   : > { %3278 = vmatprep.subr.bf16.mxu1 %v3599_v4 }
0x1369   : > { %3129 = vmatmul.mubr.f32.vlgmr.msra.gmra.mrb[10].mxu1 %v3601_v12 }
0x136a   : > { %3280 = vmatpush3.bf16.msra.mxu1 %v4015_v13  ;;  %3139 = vmatprep.mubr.msk.f32.mxu1 %vm3600_vm0, %v3601_v12 }
0x136b   : > { %3281 = vmatprep.subr.bf16.mxu1 %v3599_v4 }
0x136e   : > { %3283 = vmatpush3.bf16.msra.mxu1 %v4025_v10 }
0x136f   : > { %3290 = vmatprep.subr.bf16.mxu1 %v3599_v4 }
0x1434   : > { %v1469_v59 = vpop.f32.mrb[8].mxu1 }
0x1435   : > { %v1473_v61 = vadd.f32 %v1469_v59, %v554_v57  ;;  %v3099_v63 = vpop.f32.mrb[9].mxu1 }
0x1437   : > { %v2836_v2 = vmul.f32 -1.442695, %v1473_v61 }
0x143c   : > { %v1751_v6 = vpop.f32.mrb[10].mxu1 }
0x143d   : > { %v1755_v7 = vadd.f32 %v1751_v6, %v1632_v3  ;;  %v3130_v9 = vpop.f32.mrb[11].mxu1 }
0x143f   : > { %3431 = vtanh.f32 %v1755_v7  ;;  %v2847_v19 = vmul.f32 -1.442695, %v1755_v7  ;;  %v4131_v7 = vsel %vm1383_vm15, %v4005_v43, %v4002_v39 }
0x1441   : > { %3433 = vpow2.f32 %v2847_v19 }
0x1449   : > { %v3432_v16 = vpop.eup %3431 }
0x144a   : > { %1765 = vrot.lane.b32.xlu1 %v3432_v16, %s4495_s29 }
0x144b   : > { %v3434_v14 = vpop.eup %3433 }
0x144c   : > { %v1759_v20 = vadd.f32 1.0, %v3434_v14 }
0x144e   : > { %1782 = vperm.xlu1 %3373, %v3783_v18   ;;  %3435 = vrcp.f32 %v1759_v20 }
0x1458   : > { %v3436_v23 = vpop.eup %3435 }
0x1459   : > { %v1763_v25 = vmul.f32 0.0, %v3436_v23 }
0x14bc   : > { %v1766_v15 = vpop.permute.xlu1 %1765 }
0x14bd   : > { %v1768_v24 = vmul.f32 %v3436_v23, %v1766_v15 }
0x14bf   : > { %1770 = vrot.lane.b32.xlu0 %v1768_v24, %s4496_s30  ;;  %v1029_v24 = vsel %vm1026_vm9, %v3900_v0, 0.0 }
0x14cd   : > { %v4072_v30 = vpop.permute.xlu1 %1782 }
0x14ce   : > { %vm1784_vm2 = vcmp.eq.s32.totalorder %v4072_v30, 1 }
0x1531   : > { %v1771_v11 = vpop.permute.xlu0 %1770 }
0x1532   : > { %v4067_v27 = vadd.f32 %v1771_v11, %v1763_v25 }
0x1534   : > { %3437 = vtanh.f32 %v4067_v27  ;;  %v4143_v33 = vsel %vm1784_vm2, %v4067_v27, 0.0  ;;  %v1267_v27 = vsel %vm1264_vm13, %v3955_v60, 0.0 }
0x1535   : > { %3439 = vtanh.f32 %v1473_v61 }
0x1536   : > { %3441 = vpow2.f32 %v2836_v2 }
0x153e   : > { %v3438_v28 = vpop.eup %3437 }
0x153f   : > { %1776 = vrot.lane.b32.xlu0 %v3438_v28, %s4495_s29  ;;  %v3440_v18 = vpop.eup %3439 }
0x1540   : > { %v3442_v5 = vpop.eup %3441 }
0x1541   : > { %v1477_v29 = vadd.f32 1.0, %v3442_v5 }
0x1543   : > { %1483 = vrot.lane.b32.xlu0 %v3440_v18, %s4495_s29  ;;  %3443 = vrcp.f32 %v1477_v29 }
0x154d   : > { %v4080_v41 = vpop.eup %3443 }
0x154e   : > { %v1481_v51 = vmul.f32 %v4080_v41, %v4131_v7 }
0x15b1   : > { %v1777_v31 = vpop.permute.xlu0 %1776 }
0x15b2   : > { %v1779_v32 = vmul.f32 %v3436_v23, %v1777_v31 }
0x15b4   : > { %v4078_v37 = vsel %vm1784_vm2, %v1779_v32, 0.0 }
0x15b5   : > { %1788 = vrot.lane.b32.xlu1 %v4078_v37, %s4496_s30  ;;  %v1484_v42 = vpop.permute.xlu0 %1483 }
0x15b6   : > { %v1486_v44 = vmul.f32 %v4080_v41, %v1484_v42 }
0x15b8   : > { %1488 = vrot.lane.b32.xlu0 %v1486_v44, %s4496_s30 }
0x15bc   : > { %1500 = vperm.xlu0 %3374, %v4087_v45  }
0x15c0   : > { %1894 = vperm.xlu0 %3374, %v3816_v48  }
0x15c4   : > { %912 = vrot.lane.b32.xlu0 %v910_v46, %s4496_s30 }
0x15c8   : > { %1150 = vrot.lane.b32.xlu0 %v1148_v47, %s4496_s30 }
0x15cc   : > { %1388 = vrot.lane.b32.xlu0 %v1386_v17, %s4496_s30 }
0x1627   : > { %v1789_v48 = vpop.permute.xlu1 %1788 }
0x1628   : > { %1791 = vst.msk [vmem:[%s3801_s11] sm:$0xff] %vm427_vm1, %v1789_v48  ;;  %3140 = vmatmul.mubr.msk.f32.vlgmr.msra.gmra.mrb[12].mxu1 %vm427_vm1, %v1789_v48 }
0x1629   : > { %3292 = vmatpush3.bf16.msra.mxu1 %v4015_v13  ;;  %3161 = vmatprep.mubr.msk.f32.mxu1 %vm3600_vm0, %v3601_v12 }
0x162a   : > { %3293 = vmatprep.subr.bf16.mxu1 %v3599_v4  ;;  %v1489_v38 = vpop.permute.xlu0 %1488 }
0x162b   : > { %v4135_v9 = vadd.f32 %v1489_v38, %v1481_v51 }
0x162d   : > { %3295 = vmatpush3.bf16.msra.mxu1 %v4025_v10 }
0x162e   : > { %3302 = vmatprep.subr.bf16.mxu1 %v3599_v4 }
0x163b   : > { %v4112_v40 = vpop.permute.xlu0 %1500 }
0x163c   : > { %vm1502_vm4 = vcmp.eq.s32.totalorder %v4112_v40, 1 }
0x163f   : > { %v4114_v34 = vpop.permute.xlu0 %1894 }
0x1640   : > { %vm1896_vm5 = vcmp.eq.s32.totalorder %v4114_v34, 1 }
0x1643   : > { %v913_v36 = vpop.permute.xlu0 %912 }
0x1644   : > { %2817 = vst.msk [vmem:[%s3801_s11 + $0x10] sm:$0xff] %vm427_vm1, %v913_v36 }
0x1647   : > { %v1151_v49 = vpop.permute.xlu0 %1150 }
0x1648   : > { %2825 = vst.msk [vmem:[%s3801_s11 + $0x20] sm:$0xff] %vm427_vm1, %v1151_v49 }
0x164b   : > { %v1389_v52 = vpop.permute.xlu0 %1388  ;;  %v1524_v53 = vld [vmem:[%s3801_s11 + $0x10] sm:$0xff] }
0x164c   : > { %2833 = vst.msk [vmem:[%s3801_s11 + $0x30] sm:$0xff] %vm427_vm1, %v1389_v52  ;;  %3111 = vmatprep.mubr.msk.f32.mxu0 %vm427_vm1, %v1524_v53 }
0x164f   : > { %v1526_v29 = vld [vmem:[%s3801_s11 + $0x20] sm:$0xff] }
0x1653   : > { %v1528_v31 = vld [vmem:[%s3801_s11 + $0x30] sm:$0xff] }
0x16fb   : > { %v1863_v56 = vpop.f32.mrb[12].mxu1 }
0x16fc   : > { %v1867_v57 = vadd.f32 %v1863_v56, %v1637_v54  ;;  %v3141_v59 = vpop.f32.mrb[13].mxu1 }
0x16fe   : > { %3445 = vtanh.f32 %v1867_v57  ;;  %v2850_v63 = vmul.f32 -1.442695, %v1867_v57 }
0x1700   : > { %3447 = vpow2.f32 %v2850_v63 }
0x1708   : > { %v3446_v61 = vpop.eup %3445 }
0x1709   : > { %1877 = vrot.lane.b32.xlu1 %v3446_v61, %s4495_s29 }
0x170a   : > { %v3448_v3 = vpop.eup %3447 }
0x170b   : > { %v1871_v6 = vadd.f32 1.0, %v3448_v3 }
0x170d   : > { %3449 = vrcp.f32 %v1871_v6 }
0x170e   : > { %3451 = vtanh.f32 %v4135_v9 }
0x1717   : > { %v3450_v16 = vpop.eup %3449 }
0x1718   : > { %v3452_v20 = vpop.eup %3451  ;;  %v1875_v39 = vmul.f32 %v3450_v16, %v4143_v33 }
0x177b   : > { %v1878_v19 = vpop.permute.xlu1 %1877 }
0x177c   : > { %v1880_v14 = vmul.f32 %v3450_v16, %v1878_v19 }
0x177e   : > { %1882 = vrot.lane.b32.xlu1 %v1880_v14, %s4496_s30 }
0x1782   : > { %1494 = vrot.lane.b32.xlu1 %v3452_v20, %s4495_s29 }
0x17f0   : > { %v1883_v43 = vpop.permute.xlu1 %1882 }
0x17f1   : > { %v4146_v23 = vadd.f32 %v1883_v43, %v1875_v39 }
0x17f3   : > { %3453 = vtanh.f32 %v4146_v23  ;;  %v1897_v61 = vsel %vm1896_vm5, %v4146_v23, %v4143_v33 }
0x17f4   : > { %v1495_v25 = vpop.permute.xlu1 %1494 }
0x17f5   : > { %v4155_v11 = vmul.f32 %v4080_v41, %v1495_v25 }
0x17f7   : > { %v1505_v62 = vsel %vm1502_vm4, %v4155_v11, 0.0 }
0x17fd   : > { %v3454_v15 = vpop.eup %3453 }
0x17fe   : > { %1888 = vrot.lane.b32.xlu1 %v3454_v15, %s4495_s29 }
0x1802   : > { %1031 = vrot.lane.b32.xlu1 %v1029_v24, %s4496_s30 }
0x1806   : > { %1269 = vrot.lane.b32.xlu1 %v1267_v27, %s4496_s30 }
0x180a   : > { %1507 = vrot.lane.b32.xlu1 %v1505_v62, %s4496_s30 }
0x1870   : > { %v1889_v0 = vpop.permute.xlu1 %1888 }
0x1871   : > { %v4166_v28 = vmul.f32 %v3450_v16, %v1889_v0 }
0x1873   : > { %v1898_v58 = vsel %vm1896_vm5, %v4166_v28, %v4078_v37 }
0x1874   : > { %v1032_v60 = vpop.permute.xlu1 %1031  ;;  %1909 = vrot.lane.b32.xlu0 %v1898_v58, %s4496_s30 }
0x1875   : > { %2821 = vst.msk [vmem:[%s3801_s11 + $0x18] sm:$0xff] %vm427_vm1, %v1032_v60 }
0x1878   : > { %v1270_v18 = vpop.permute.xlu1 %1269 }
0x1879   : > { %2829 = vst.msk [vmem:[%s3801_s11 + $0x28] sm:$0xff] %vm427_vm1, %v1270_v18 }
0x187c   : > { %v1508_v2 = vpop.permute.xlu1 %1507  ;;  %v1525_v5 = vld [vmem:[%s3801_s11 + $0x18] sm:$0xff] }
0x187d   : > { %2837 = vst.msk [vmem:[%s3801_s11 + $0x38] sm:$0xff] %vm427_vm1, %v1508_v2  ;;  %3112 = vmatmul.mubr.msk.f32.gmra.mrb[16].mxu0 %vm427_vm1, %v1525_v5 }
0x187e   : > { %3114 = vmatprep.mubr.msk.f32.mxu0 %vm427_vm1, %v1526_v29 }
0x1880   : > { %v1527_v30 = vld [vmem:[%s3801_s11 + $0x28] sm:$0xff] }
0x1881   : > { %3115 = vmatmul.mubr.msk.f32.gmra.mrb[18].mxu0 %vm427_vm1, %v1527_v30 }
0x1882   : > { %3117 = vmatprep.mubr.msk.f32.mxu0 %vm427_vm1, %v1528_v31 }
0x1884   : > { %v1529_v32 = vld [vmem:[%s3801_s11 + $0x38] sm:$0xff] }
0x1885   : > { %3118 = vmatmul.mubr.msk.f32.gmra.mrb[20].mxu0 %vm427_vm1, %v1529_v32 }
0x1886   : > { %3150 = vmatprep.mubr.msk.f32.mxu0 %vm3600_vm0, %v3601_v12 }
0x18e6   : > { %v1910_v35 = vpop.permute.xlu0 %1909 }
0x18e7   : > { %3151 = vmatmul.mubr.msk.f32.vlgmr.msra.gmra.mrb[22].mxu0 %vm427_vm1, %v1910_v35 }
0x18e8   : > { %3298 = vmatpush3.bf16.msra.mxu0 %v4015_v13  ;;  %3172 = vmatprep.mubr.msk.f32.mxu0 %vm3600_vm0, %v3601_v12 }
0x18e9   : > { %3299 = vmatprep.subr.bf16.mxu0 %v3599_v4 }
0x18ec   : > { %3301 = vmatpush3.bf16.msra.mxu0 %v4025_v10 }
0x18ed   : > { %3308 = vmatprep.subr.bf16.mxu0 %v3599_v4 }
0x1950   : > { %v3113_v37 = vpop.f32.mrb[16].mxu0 }
0x1951   : > { %v1641_v41 = vpop.f32.mrb[17].mxu0  ;;  %v1647_v33 = vadd.f32 %v3113_v37, %v4061_v1 }
0x1952   : > { %v1642_v17 = vadd.f32 %v4061_v1, %v1641_v41 }
0x1954   : > { %v4199_v42 = vpop.f32.mrb[18].mxu0 }
0x1955   : > { %v4201_v44 = vpop.f32.mrb[19].mxu0 }
0x1956   : > { %v1652_v37 = vadd.f32 %v4061_v1, %v4201_v44 }
0x1958   : > { %v4203_v46 = vpop.f32.mrb[20].mxu0 }
0x1959   : > { %v4205_v47 = vpop.f32.mrb[21].mxu0 }
0x19ba   : > { %v1979_v48 = vpop.f32.mrb[22].mxu0 }
0x19bb   : > { %v1983_v38 = vadd.f32 %v1979_v48, %v1642_v17  ;;  %v3152_v36 = vpop.f32.mrb[23].mxu0 }
0x19bd   : > { %3455 = vtanh.f32 %v1983_v38  ;;  %v2854_v52 = vmul.f32 -1.442695, %v1983_v38 }
0x19bf   : > { %3457 = vpow2.f32 %v2854_v52 }
0x19c7   : > { %v3456_v49 = vpop.eup %3455 }
0x19c8   : > { %1993 = vrot.lane.b32.xlu1 %v3456_v49, %s4495_s29 }
0x19c9   : > { %v3458_v53 = vpop.eup %3457 }
0x19ca   : > { %v1987_v54 = vadd.f32 1.0, %v3458_v53 }
0x19cc   : > { %2010 = vperm.xlu1 %3373, %v3864_v26   ;;  %3459 = vrcp.f32 %v1987_v54 }
0x19d6   : > { %v3460_v56 = vpop.eup %3459 }
0x19d7   : > { %v1991_v63 = vmul.f32 %v3460_v56, %v1897_v61 }
0x1a3a   : > { %v1994_v57 = vpop.permute.xlu1 %1993 }
0x1a3b   : > { %v1996_v59 = vmul.f32 %v3460_v56, %v1994_v57 }
0x1a3d   : > { %1998 = vrot.lane.b32.xlu0 %v1996_v59, %s4496_s30 }
0x1a4b   : > { %v4216_v51 = vpop.permute.xlu1 %2010 }
0x1a4c   : > { %vm2012_vm6 = vcmp.eq.s32.totalorder %v4216_v51, 1 }
0x1aaf   : > { %v1999_v3 = vpop.permute.xlu0 %1998 }
0x1ab0   : > { %v2001_v6 = vadd.f32 %v1999_v3, %v1991_v63 }
0x1ab2   : > { %3461 = vtanh.f32 %v2001_v6  ;;  %v2013_v60 = vsel %vm2012_vm6, %v2001_v6, %v1897_v61 }
0x1abc   : > { %v3462_v26 = vpop.eup %3461 }
0x1abd   : > { %2004 = vrot.lane.b32.xlu0 %v3462_v26, %s4495_s29 }
0x1b2f   : > { %v2005_v16 = vpop.permute.xlu0 %2004 }
0x1b30   : > { %v4218_v19 = vmul.f32 %v3460_v56, %v2005_v16 }
0x1b32   : > { %v2014_v14 = vsel %vm2012_vm6, %v4218_v19, %v1898_v58 }
0x1b33   : > { %2025 = vrot.lane.b32.xlu1 %v2014_v14, %s4496_s30 }
0x1ba5   : > { %v2026_v20 = vpop.permute.xlu1 %2025 }
0x1ba6   : > { %3162 = vmatmul.mubr.msk.f32.vlgmr.msra.gmra.mrb[14].mxu1 %vm427_vm1, %v2026_v20 }
0x1ba7   : > { %3304 = vmatpush3.bf16.msra.mxu1 %v4015_v13  ;;  %3183 = vmatprep.mubr.msk.f32.mxu1 %vm3600_vm0, %v3601_v12 }
0x1ba8   : > { %3305 = vmatprep.subr.bf16.mxu1 %v3599_v4 }
0x1bab   : > { %3307 = vmatpush3.bf16.msra.mxu1 %v4025_v10 }
0x1bac   : > { %3314 = vmatprep.subr.bf16.mxu1 %v3599_v4 }
0x1c79   : > { %v2095_v39 = vpop.f32.mrb[14].mxu1 }
0x1c7a   : > { %v2099_v43 = vadd.f32 %v2095_v39, %v1647_v33  ;;  %v3163_v23 = vpop.f32.mrb[15].mxu1 }
0x1c7c   : > { %3463 = vtanh.f32 %v2099_v43  ;;  %v2858_v24 = vmul.f32 -1.442695, %v2099_v43 }
0x1c7e   : > { %3465 = vpow2.f32 %v2858_v24 }
0x1c86   : > { %v3464_v15 = vpop.eup %3463 }
0x1c87   : > { %2109 = vrot.lane.b32.xlu0 %v3464_v15, %s4495_s29 }
0x1c88   : > { %v3466_v25 = vpop.eup %3465 }
0x1c89   : > { %v2103_v27 = vadd.f32 1.0, %v3466_v25 }
0x1c8b   : > { %2126 = vperm.xlu0 %3374, %v3891_v50   ;;  %3467 = vrcp.f32 %v2103_v27 }
0x1c95   : > { %v3468_v62 = vpop.eup %3467 }
0x1c96   : > { %v2107_v18 = vmul.f32 %v3468_v62, %v2013_v60 }
0x1cf9   : > { %v2110_v0 = vpop.permute.xlu0 %2109 }
0x1cfa   : > { %v2112_v58 = vmul.f32 %v3468_v62, %v2110_v0 }
0x1cfc   : > { %2114 = vrot.lane.b32.xlu1 %v2112_v58, %s4496_s30 }
0x1d0a   : > { %v4239_v50 = vpop.permute.xlu0 %2126 }
0x1d0b   : > { %vm2128_vm7 = vcmp.eq.s32.totalorder %v4239_v50, 1 }
0x1d6e   : > { %v2115_v2 = vpop.permute.xlu1 %2114 }
0x1d6f   : > { %v2117_v5 = vadd.f32 %v2115_v2, %v2107_v18  ;;  %v1662_v2 = vadd.f32 %v4061_v1, %v4205_v47 }
0x1d71   : > { %3469 = vtanh.f32 %v2117_v5  ;;  %v2129_v44 = vsel %vm2128_vm7, %v2117_v5, %v2013_v60 }
0x1d7b   : > { %v3470_v29 = vpop.eup %3469 }
0x1d7c   : > { %2120 = vrot.lane.b32.xlu1 %v3470_v29, %s4495_s29 }
0x1dee   : > { %v2121_v30 = vpop.permute.xlu1 %2120 }
0x1def   : > { %v4241_v31 = vmul.f32 %v3468_v62, %v2121_v30 }
0x1df1   : > { %v2130_v32 = vsel %vm2128_vm7, %v4241_v31, %v2014_v14  ;;  %v1657_v14 = vadd.f32 %v4199_v42, %v4061_v1 }
0x1df2   : > { %2141 = vrot.lane.b32.xlu0 %v2130_v32, %s4496_s30 }
0x1e64   : > { %v2142_v35 = vpop.permute.xlu0 %2141 }
0x1e65   : > { %3173 = vmatmul.mubr.msk.f32.vlgmr.msra.gmra.mrb[24].mxu0 %vm427_vm1, %v2142_v35 }
0x1e66   : > { %3310 = vmatpush3.bf16.msra.mxu0 %v4015_v13  ;;  %3194 = vmatprep.mubr.msk.f32.mxu0 %vm3600_vm0, %v3601_v12 }
0x1e67   : > { %3311 = vmatprep.subr.bf16.mxu0 %v3599_v4 }
0x1e6a   : > { %3313 = vmatpush3.bf16.msra.mxu0 %v4025_v10 }
0x1f38   : > { %v2211_v41 = vpop.f32.mrb[24].mxu0 }
0x1f39   : > { %v2215_v17 = vadd.f32 %v2211_v41, %v1652_v37  ;;  %v3174_v48 = vpop.f32.mrb[25].mxu0 }
0x1f3b   : > { %3471 = vtanh.f32 %v2215_v17  ;;  %v2862_v36 = vmul.f32 -1.442695, %v2215_v17 }
0x1f3d   : > { %3473 = vpow2.f32 %v2862_v36 }
0x1f45   : > { %v3472_v38 = vpop.eup %3471 }
0x1f46   : > { %2225 = vrot.lane.b32.xlu1 %v3472_v38, %s4495_s29 }
0x1f47   : > { %v3474_v49 = vpop.eup %3473 }
0x1f48   : > { %v2219_v52 = vadd.f32 1.0, %v3474_v49 }
0x1f4a   : > { %2242 = vperm.xlu1 %3373, %v3918_v22   ;;  %3475 = vrcp.f32 %v2219_v52 }
0x1f54   : > { %v3476_v53 = vpop.eup %3475 }
0x1f55   : > { %v2223_v57 = vmul.f32 %v3476_v53, %v2129_v44 }
0x1fb8   : > { %v2226_v54 = vpop.permute.xlu1 %2225 }
0x1fb9   : > { %v2228_v56 = vmul.f32 %v3476_v53, %v2226_v54 }
0x1fbb   : > { %2230 = vrot.lane.b32.xlu0 %v2228_v56, %s4496_s30 }
0x1fc9   : > { %v4262_v22 = vpop.permute.xlu1 %2242 }
0x1fca   : > { %vm2244_vm8 = vcmp.eq.s32.totalorder %v4262_v22, 1 }
0x202d   : > { %v2231_v59 = vpop.permute.xlu0 %2230 }
0x202e   : > { %v2233_v61 = vadd.f32 %v2231_v59, %v2223_v57  ;;  %v1667_v59 = vadd.f32 %v4203_v46, %v4061_v1  ;;  %v1899_v1 = vsel %vm1896_vm5, %v4166_v28, 0.0  ;;  %v2131_v46 = vsel %vm2128_vm7, %v4241_v31, 0.0 }
0x2030   : > { %3477 = vtanh.f32 %v2233_v61  ;;  %v2245_v42 = vsel %vm2244_vm8, %v2233_v61, %v2129_v44 }
0x203a   : > { %v3478_v63 = vpop.eup %3477 }
0x203b   : > { %2236 = vrot.lane.b32.xlu0 %v3478_v63, %s4495_s29 }
0x20ad   : > { %v2237_v3 = vpop.permute.xlu0 %2236 }
0x20ae   : > { %v4264_v6 = vmul.f32 %v3476_v53, %v2237_v3 }
0x20b0   : > { %v2246_v26 = vsel %vm2244_vm8, %v4264_v6, %v2130_v32  ;;  %v2247_v40 = vsel %vm2244_vm8, %v4264_v6, 0.0 }
0x20b1   : > { %2257 = vrot.lane.b32.xlu1 %v2246_v26, %s4496_s30 }
0x2123   : > { %v2258_v16 = vpop.permute.xlu1 %2257 }
0x2124   : > { %3184 = vmatmul.mubr.msk.f32.vlgmr.msra.gmra.mrb[16].mxu1 %vm427_vm1, %v2258_v16  ;;  %v1504_v16 = vsel %vm1502_vm4, %v4155_v11, %v4038_v55 }
0x2125   : > { %3316 = vmatpush3.bf16.msra.mxu1 %v4015_v13  ;;  %3205 = vmatprep.mubr.msk.f32.mxu1 %vm3600_vm0, %v3601_v12 }
0x2126   : > { %3317 = vmatprep.subr.bf16.mxu1 %v3599_v4 }
0x2129   : > { %3319 = vmatpush3.bf16.msra.mxu1 %v4025_v10 }
0x21f7   : > { %v2327_v20 = vpop.f32.mrb[16].mxu1 }
0x21f8   : > { %v2331_v33 = vadd.f32 %v2327_v20, %v1657_v14  ;;  %v3185_v39 = vpop.f32.mrb[17].mxu1 }
0x21fa   : > { %3479 = vtanh.f32 %v2331_v33  ;;  %v2866_v13 = vmul.f32 -1.442695, %v2331_v33 }
0x21fc   : > { %3481 = vpow2.f32 %v2866_v13 }
0x2204   : > { %v3480_v43 = vpop.eup %3479 }
0x2205   : > { %2341 = vrot.lane.b32.xlu0 %v3480_v43, %s4495_s29 }
0x2206   : > { %v3482_v23 = vpop.eup %3481 }
0x2207   : > { %v2335_v12 = vadd.f32 1.0, %v3482_v23 }
0x2209   : > { %2358 = vperm.xlu0 %3374, %v3946_v8   ;;  %3483 = vrcp.f32 %v2335_v12 }
0x2213   : > { %v3484_v4 = vpop.eup %3483 }
0x2214   : > { %v2339_v24 = vmul.f32 %v3484_v4, %v2245_v42 }
0x2277   : > { %v2342_v15 = vpop.permute.xlu0 %2341 }
0x2278   : > { %v2344_v10 = vmul.f32 %v3484_v4, %v2342_v15 }
0x227a   : > { %2346 = vrot.lane.b32.xlu1 %v2344_v10, %s4496_s30  ;;  %v1503_v10 = vsel %vm1502_vm4, %v4135_v9, %v4131_v7 }
0x2288   : > { %v2359_v8 = vpop.permute.xlu0 %2358 }
0x2289   : > { %vm2360_vm0 = vcmp.eq.s32.totalorder %v2359_v8, 1 }
0x22ec   : > { %v2347_v25 = vpop.permute.xlu1 %2346 }
0x22ed   : > { %v2349_v27 = vadd.f32 %v2347_v25, %v2339_v24  ;;  %v2015_v24 = vsel %vm2012_vm6, %v4218_v19, 0.0 }
0x22ef   : > { %3485 = vtanh.f32 %v2349_v27  ;;  %v2361_v47 = vsel %vm2360_vm0, %v2349_v27, %v2245_v42 }
0x22f9   : > { %v3486_v62 = vpop.eup %3485 }
0x22fa   : > { %2352 = vrot.lane.b32.xlu1 %v3486_v62, %s4495_s29 }
0x236c   : > { %v2353_v0 = vpop.permute.xlu1 %2352 }
0x236d   : > { %v2355_v58 = vmul.f32 %v3484_v4, %v2353_v0 }
0x236f   : > { %v2362_v60 = vsel %vm2360_vm0, %v2355_v58, %v2246_v26 }
0x2370   : > { %2373 = vrot.lane.b32.xlu0 %v2362_v60, %s4496_s30 }
0x23e2   : > { %v2374_v18 = vpop.permute.xlu0 %2373 }
0x23e3   : > { %3195 = vmatmul.mubr.msk.f32.vlgmr.msra.gmra.mrb[26].mxu0 %vm427_vm1, %v2374_v18 }
0x24b6   : > { %v2443_v5 = vpop.f32.mrb[26].mxu0 }
0x24b7   : > { %v2447_v29 = vadd.f32 %v2443_v5, %v1662_v2  ;;  %v3196_v30 = vpop.f32.mrb[27].mxu0 }
0x24b9   : > { %3487 = vtanh.f32 %v2447_v29  ;;  %v2870_v35 = vmul.f32 -1.442695, %v2447_v29 }
0x24bb   : > { %3489 = vpow2.f32 %v2870_v35 }
0x24c3   : > { %v3488_v32 = vpop.eup %3487 }
0x24c4   : > { %2457 = vrot.lane.b32.xlu1 %v3488_v32, %s4495_s29 }
0x24c5   : > { %v3490_v37 = vpop.eup %3489 }
0x24c6   : > { %v2451_v41 = vadd.f32 1.0, %v3490_v37 }
0x24c8   : > { %2474 = vperm.xlu1 %3373, %v3973_v21   ;;  %3491 = vrcp.f32 %v2451_v41 }
0x24d2   : > { %v3492_v17 = vpop.eup %3491 }
0x24d3   : > { %v2455_v36 = vmul.f32 %v3492_v17, %v2361_v47 }
0x2536   : > { %v2458_v48 = vpop.permute.xlu1 %2457 }
0x2537   : > { %v2460_v38 = vmul.f32 %v3492_v17, %v2458_v48 }
0x2539   : > { %2462 = vrot.lane.b32.xlu0 %v2460_v38, %s4496_s30 }
0x2547   : > { %v4295_v21 = vpop.permute.xlu1 %2474 }
0x2548   : > { %vm2476_vm9 = vcmp.eq.s32.totalorder %v4295_v21, 1 }
0x25ab   : > { %v2463_v49 = vpop.permute.xlu0 %2462 }
0x25ac   : > { %v2465_v52 = vadd.f32 %v2463_v49, %v2455_v36 }
0x25ae   : > { %3493 = vtanh.f32 %v2465_v52  ;;  %v2477_v13 = vsel %vm2476_vm9, %v2465_v52, %v2361_v47 }
0x25b8   : > { %v3494_v53 = vpop.eup %3493 }
0x25b9   : > { %2468 = vrot.lane.b32.xlu0 %v3494_v53, %s4495_s29 }
0x262b   : > { %v2469_v54 = vpop.permute.xlu0 %2468 }
0x262c   : > { %v2471_v56 = vmul.f32 %v3492_v17, %v2469_v54 }
0x262e   : > { %v4300_v44 = vsel %vm2476_vm9, %v2471_v56, %v2362_v60  ;;  %v2479_v7 = vsel %vm2476_vm9, %v2471_v56, 0.0 }
0x262f   : > { %2489 = vrot.lane.b32.xlu1 %v4300_v44, %s4496_s30 }
0x26a1   : > { %v2490_v57 = vpop.permute.xlu1 %2489 }
0x26a2   : > { %3206 = vmatmul.mubr.msk.f32.vlgmr.msra.gmra.mrb[18].mxu1 %vm427_vm1, %v2490_v57 }
0x2775   : > { %v2559_v61 = vpop.f32.mrb[18].mxu1 }
0x2776   : > { %v2563_v63 = vadd.f32 %v2559_v61, %v1667_v59  ;;  %v3207_v3 = vpop.f32.mrb[19].mxu1 }
0x2778   : > { %3495 = vtanh.f32 %v2563_v63  ;;  %v2874_v55 = vmul.f32 -1.442695, %v2563_v63 }
0x277a   : > { %3497 = vpow2.f32 %v2874_v55 }
0x2782   : > { %v3496_v26 = vpop.eup %3495 }
0x2783   : > { %2573 = vrot.lane.b32.xlu0 %v3496_v26, %s4495_s29 }
0x2784   : > { %v3498_v11 = vpop.eup %3497 }
0x2785   : > { %v2567_v34 = vadd.f32 1.0, %v3498_v11 }
0x2787   : > { %2590 = vperm.xlu0 %3374, %v4087_v45   ;;  %v2363_v45 = vsel %vm2360_vm0, %v2355_v58, 0.0  ;;  %3499 = vrcp.f32 %v2567_v34 }
0x278b   : > { %1513 = vrot.lane.b32.xlu0 %v1504_v16, %s4496_s30 }
0x278f   : > { %1901 = vrot.lane.b32.xlu0 %v1899_v1, %s4496_s30 }
0x2791   : > { %v3500_v28 = vpop.eup %3499 }
0x2792   : > { %v2571_v23 = vmul.f32 %v3500_v28, %v2477_v13 }
0x2793   : > { %2133 = vrot.lane.b32.xlu0 %v2131_v46, %s4496_s30 }
0x2797   : > { %2365 = vrot.lane.b32.xlu0 %v2363_v45, %s4496_s30 }
0x27f5   : > { %v2574_v14 = vpop.permute.xlu0 %2573 }
0x27f6   : > { %v2576_v20 = vmul.f32 %v3500_v28, %v2574_v14 }
0x27f8   : > { %2578 = vrot.lane.b32.xlu1 %v2576_v20, %s4496_s30 }
0x2806   : > { %v2591_v50 = vpop.permute.xlu0 %2590 }
0x2807   : > { %vm2592_vm10 = vcmp.eq.s32.totalorder %v2591_v50, 1 }
0x280a   : > { %v1514_v31 = vpop.permute.xlu0 %1513 }
0x280b   : > { %1516 = vst.msk [vmem:[%s4331_s27] sm:$0xff] %vm427_vm1, %v1514_v31 }
0x280e   : > { %v1902_v33 = vpop.permute.xlu0 %1901 }
0x280f   : > { %2851 = vst.msk [vmem:[%s3801_s11 + $0x8] sm:$0xff] %vm427_vm1, %v1902_v33 }
0x2812   : > { %v2134_v39 = vpop.permute.xlu0 %2133 }
0x2813   : > { %2859 = vst.msk [vmem:[%s3801_s11 + $0x18] sm:$0xff] %vm427_vm1, %v2134_v39 }
0x2816   : > { %v2366_v43 = vpop.permute.xlu0 %2365 }
0x2817   : > { %2867 = vst.msk [vmem:[%s3801_s11 + $0x28] sm:$0xff] %vm427_vm1, %v2366_v43 }
0x286a   : > { %v2579_v12 = vpop.permute.xlu1 %2578 }
0x286b   : > { %v2581_v4 = vadd.f32 %v2579_v12, %v2571_v23 }
0x286d   : > { %3501 = vtanh.f32 %v2581_v4  ;;  %v2593_v42 = vsel %vm2592_vm10, %v2581_v4, %v2477_v13 }
0x2877   : > { %v3502_v15 = vpop.eup %3501 }
0x2878   : > { %2584 = vrot.lane.b32.xlu1 %v3502_v15, %s4495_s29  ;;  %s387_s29 = scalar_lea.vmem [#allocation5], %s2792_s25  ;;  %s2624_s25 = scalar_lea.sflag [#allocation6], %s4326_s26 }
0x2879   : > { %s2657_s18 = sshll.u32 %s387_s29, 4  ;;  %s4367_s18 = int_to_ptr.vmem [resolvable:$true] %s2657_s18 }
0x287a   : > { %s3503_s0 = scalar_lea.vmem %s4367_s18, 256  ;;  %p3510_p0 = scmp.lt.s32.totalorder %s4367_s18, %s3508_s2 }
0x287b   : > { %p3504_p11 = scmp.ne.s32.totalorder %s4367_s18, %s3503_s0  ;;  %p3511_p1 = scmp.lt.s32.totalorder %s3509_s3, %s3503_s0 }
0x287c   : > { %1518 = vrot.lane.b32.xlu1 %v1503_v10, %s3605_s28 }
0x287d   : > { %p3505_p12 = pnand %p3504_p11, %p3703_p5  ;;  %p3512_p2 = por %p3511_p1, %p3510_p0 }
0x287f   : > { %p3506_p13 = pneg %p3505_p12 }
0x2880   : > { %2608 = vrot.lane.b32.xlu1 %v2593_v42, %s3605_s28  ;;  %s4375_s28 = scalar_lea.hbm %s4480_s10, %s2886_s20 }
0x2881   : > { %p3513_p3 = pnand %p3512_p2, %p3506_p13 }
0x2884   : > { %2017 = vrot.lane.b32.xlu1 %v2015_v24, %s4496_s30 }
0x2888   : > { %2249 = vrot.lane.b32.xlu1 %v2247_v40, %s4496_s30 }
0x288c   : > { %2481 = vrot.lane.b32.xlu1 %v2479_v7, %s4496_s30 }
0x28ea   : > { %v2585_v9 = vpop.permute.xlu1 %2584 }
0x28eb   : > { %v2587_v25 = vmul.f32 %v3500_v28, %v2585_v9 }
0x28ed   : > { %v2594_v51 = vsel %vm2592_vm10, %v2587_v25, %v4300_v44  ;;  %v2595_v22 = vsel %vm2592_vm10, %v2587_v25, 0.0 }
0x28ee   : > { %2602 = vrot.lane.b32.xlu0 %v2594_v51, %s4496_s30  ;;  %v1519_v19 = vpop.permute.xlu1 %1518 }
0x28ef   : > { %1521 = vst.msk [vmem:[%s387_s29] sm:$0xff] %vm427_vm1, %v1519_v19 }
0x28f2   : > { %2597 = vrot.lane.b32.xlu0 %v2595_v22, %s4496_s30  ;;  %v2609_v6 = vpop.permute.xlu1 %2608 }
0x28f3   : > { %2877 = vst.msk [vmem:[%s387_s29 + $0x8] sm:$0xff] %vm427_vm1, %v2609_v6 }
0x28f4   : > { %3516 = shalt.err (!%p3513_p3)
}
0x28f5   : > { %s3517_s30 = scalar_lea.hbm %s4375_s28, 256  ;;  %s3521_s1 = scalar_lea.hbm %s4480_s10, 512 }
0x28f6   : > { %p3518_p4 = scmp.ne.s32.totalorder %s4375_s28, %s3517_s30  ;;  %p3522_p9 = scmp.lt.u32.totalorder %s4375_s28, %s4480_s10 }
0x28f7   : > { %p3523_p10 = scmp.lt.u32.totalorder %s3521_s1, %s3517_s30  ;;  %p3525_p12 = scmp.lt.u32.totalorder %s3517_s30, %s4375_s28 }
0x28f8   : > { %p3519_p7 = pnand %p3518_p4, %p3703_p5 }
0x28f9   : > { %p3524_p11 = por %p3523_p10, %p3522_p9 }
0x28fa   : > { %p3520_p8 = pneg %p3519_p7 }
0x28fb   : > { %p3526_p13 = por %p3525_p12, %p3524_p11 }
0x28fd   : > { %p3527_p0 = pnand %p3526_p13, %p3520_p8 }
0x28ff   : > { %3530 = shalt.err (!%p3527_p0)
}
0x2900   : > { %s3607_s0 = smov 128   ;;  %s3608_s3 = smov 8   ;;  %v2018_v27 = vpop.permute.xlu1 %2017 }
0x2901   : > { %3321 = dma.vmem_to_hbm [thread:$0]  (%p3703_p5), %s4367_s18, 256, %s4375_s28, %s2624_s25, %s3607_s0, %s3607_s0, %s3608_s3  }
0x2902   : > { %2855 = vst.msk [vmem:[%s3801_s11 + $0x10] sm:$0xff] %vm427_vm1, %v2018_v27  ;;  %s2641_s30 = sshll.u32 %s4331_s27, 4  ;;  %s4420_s18 = scalar_lea.hbm %s4479_s9, %s2886_s20  ;;  %s4413_s30 = int_to_ptr.vmem [resolvable:$true] %s2641_s30 }
0x2903   : > { %s2619_s28 = scalar_lea.sflag [#allocation4], %s4326_s26  ;;  %s3531_s25 = scalar_lea.vmem %s4413_s30, 256 }
0x2904   : > { %v2250_v62 = vpop.permute.xlu1 %2249  ;;  %p3532_p1 = scmp.ne.s32.totalorder %s4413_s30, %s3531_s25  ;;  %s3609_s1 = smov [#allocation3]  }
0x2905   : > { %2863 = vst.msk [vmem:[%s3801_s11 + $0x20] sm:$0xff] %vm427_vm1, %v2250_v62  ;;  %s3535_s21 = sshll.u32 %s3609_s1, 4  ;;  %s3536_s21 = int_to_ptr.vmem [resolvable:$false] %s3535_s21 }
0x2906   : > { %p3533_p2 = pnand %p3532_p1, %p3703_p5  ;;  %s3537_s17 = scalar_lea.vmem %s3536_s21, 512 }
0x2907   : > { %p3538_p4 = scmp.lt.s32.totalorder %s4413_s30, %s3536_s21  ;;  %p3539_p7 = scmp.lt.s32.totalorder %s3537_s17, %s3531_s25 }
0x2908   : > { %v2482_v8 = vpop.permute.xlu1 %2481  ;;  %p3534_p3 = pneg %p3533_p2 }
0x2909   : > { %2871 = vst.msk [vmem:[%s3801_s11 + $0x30] sm:$0xff] %vm427_vm1, %v2482_v8  ;;  %p3540_p8 = por %p3539_p7, %p3538_p4 }
0x290b   : > { %p3541_p9 = pnand %p3540_p8, %p3534_p3 }
0x2960   : > { %v2603_v0 = vpop.permute.xlu0 %2602 }
0x2961   : > { %2876 = vst.msk [vmem:[%s4331_s27 + $0x8] sm:$0xff] %vm427_vm1, %v2603_v0 }
0x2962   : > { %3544 = shalt.err (!%p3541_p9)
}
0x2963   : > { %s3545_s27 = scalar_lea.hbm %s4420_s18, 256  ;;  %s3549_s29 = scalar_lea.hbm %s4479_s9, 512 }
0x2964   : > { %p3546_p10 = scmp.ne.s32.totalorder %s4420_s18, %s3545_s27  ;;  %p3550_p13 = scmp.lt.u32.totalorder %s4420_s18, %s4479_s9 }
0x2965   : > { %p3551_p0 = scmp.lt.u32.totalorder %s3549_s29, %s3545_s27  ;;  %p3553_p2 = scmp.lt.u32.totalorder %s3545_s27, %s4420_s18 }
0x2966   : > { %p3547_p11 = pnand %p3546_p10, %p3703_p5 }
0x2967   : > { %p3552_p1 = por %p3551_p0, %p3550_p13 }
0x2968   : > { %p3548_p12 = pneg %p3547_p11 }
0x2969   : > { %p3554_p3 = por %p3553_p2, %p3552_p1 }
0x296b   : > { %p3555_p4 = pnand %p3554_p3, %p3548_p12 }
0x296d   : > { %3558 = shalt.err (!%p3555_p4)
}
0x296e   : > { %3320 = dma.vmem_to_hbm [thread:$0]  (%p3703_p5), %s4413_s30, 256, %s4420_s18, %s2619_s28, %s3607_s0, %s3607_s0, %s3608_s3   ;;  %v2598_v58 = vpop.permute.xlu0 %2597 }
0x296f   : > { %2875 = vst.msk [vmem:[%s3801_s11 + $0x38] sm:$0xff] %vm427_vm1, %v2598_v58 }
0x2970 PF: > { %p3331_p7 = scmp.ge.s32.totalorder %s3597_s16, 2  ;;  %s2680_s25 = sand.u32 1, %s3585_s13  }
0x2971   : > { %s2681_s23 = scalar_lea.sflag [#allocation4], %s2680_s25 }
0x2972   : > { %p3325_p8 = pnand %p3331_p7, %p3707_p6 }
0x2974   : > { %3576 = dma.done.wait (!%p3325_p8), %s2681_s23, 256  }
0x2975   : > { %3578 = vsyncadd (!%p3325_p8), %s2681_s23, 4294967040  ;;  %s2690_s21 = scalar_lea.sflag [#allocation6], %s2680_s25 }
0x2976   : > { %3580 = dma.done.wait (!%p3325_p8), %s2690_s21, 256  }
0x2977   : > { %3582 = vsyncadd (!%p3325_p8), %s2690_s21, 4294967040  ;;  %p24_p5 = scmp.ge.s32.totalorder %s3690_s19, 4   ;;  %s4497_s13 = smov %s3589_s14 }
0x2978   : > { %s4498_s14 = smov %s3593_s15  ;;  %s4499_s15 = smov %s3701_s22 }
0x2979   : > { %s4500_s16 = smov %s3690_s19  ;;  %26 = sbr.rel (!%p24_p5) target bundleno = 10 (0xa), region = 142 }
0x2980   :  { %2695 = vsyncpa [#allocation4], 1 }
0x2981   :  { %2697 = vsyncpa [#allocation4 + $0x1], 1 }
0x2982   :  { %2698 = vsyncpa [#allocation6], 1 }
0x2983   :  { %2700 = vsyncpa [#allocation6 + $0x1], 1 }

</bundles_post_ra>
